<compile_context>
chip_gen: v5e
topology: v5e:2x2
jax: 0.10.0
libtpu: 0.0.40
codegen_flags: <defaults>
</compile_context>

<pallas_src>
import jax
import jax.numpy as jnp
import numpy as np
from jax.experimental import pallas as pl
from jax.experimental.pallas import tpu as pltpu

# ---------------- hyper-parameters ----------------
B, N, M, D, HEADS = 2, 8, 8, 32, 4          # batch, seq, cond-seq, dim, heads
DH = D // HEADS
FF_HIDDEN = 4 * D
DEPTH = 12                                   # LayerScale depth AND number of blocks
NUM_LAYERS = DEPTH
LS_INIT = 0.1 if DEPTH <= 18 else (1e-5 if DEPTH <= 24 else 1e-6)
EPS = 1e-5
ATTN_SCALE = DH ** -0.5
NEG = -1e9

BN, BM, HBN = B * N, B * M, HEADS * B * N

# ---- per-layer packed weight slab: (D rows, 512 lanes), bf16, lane-dense ----
OFF_QKV_S = 0                        # diag(g1)[Wq*scl | Wk | Wv]        (D, 3D)
OFF_WO_S = OFF_QKV_S + 3 * D         # Wo_s * ls1                        (D, D)
OFF_WQ_C = OFF_WO_S + D              # diag(gc) Wq_c * scl               (D, D)
OFF_WKV_C = OFF_WQ_C + D             # [Wk_c | Wv_c]                     (D, 2D)
OFF_WO_C = OFF_WKV_C + 2 * D         # Wo_c * lsc                        (D, D)
OFF_W1 = OFF_WO_C + D                # diag(gf) W1                       (D, FF)
OFF_W2T = OFF_W1 + FF_HIDDEN         # (W2 * lsf)^T                      (D, FF)
WCOLS = OFF_W2T + FF_HIDDEN          # = 512

# ---- per-layer packed bias slab: (8 sublanes, 128 lanes), f32 ----
ROW_BQKV_S, ROW_BKV_C, ROW_B1, ROW_BO_S, ROW_BQ_C, ROW_BO_C, ROW_B2 = range(7)


# ---------------- in-kernel helpers ----------------
def _layernorm(x):
    # affine-free LayerNorm: gain/bias are folded into the downstream matmul
    mu = jnp.mean(x, axis=-1, keepdims=True)
    xc = x - mu
    var = jnp.mean(xc * xc, axis=-1, keepdims=True)
    return xc * jax.lax.rsqrt(var + EPS)


def _dot(a, b):
    return jnp.dot(a, b, preferred_element_type=jnp.float32)


def _dot_nt(a, b):
    # a (m, k) contracted with b (n, k) along the last dim -> (m, n); avoids
    # materializing a transpose of the RHS.
    return jax.lax.dot_general(a, b, (((1,), (1,)), ((), ())),
                               preferred_element_type=jnp.float32)


# ---------------- the Pallas kernel: one transformer block per grid step ----------------
def transformer_kernel(x_ref, cond_ref, hmask_ref, bself_ref, bcond_ref,
                       w_ref, bv_ref, o_ref):
    f32, bf16 = jnp.float32, jnp.bfloat16

    # layer 0: pull the input residual stream into the VMEM-resident output block
    @pl.when(pl.program_id(0) == 0)
    def _():
        o_ref[...] = x_ref[...]

    x = o_ref[...]                        # (BN, D) f32 residual, resident in VMEM
    hmask = hmask_ref[...]                # (HBN, D) f32 static head mask (0/1)

    def wcols(off, width):                # bf16 weight-slab slice (D, width)
        return w_ref[:, off:off + width]

    def brow(row, width):                 # (1, width) f32 bias row, broadcasts over tokens
        return bv_ref[row:row + 1, 0:width]

    def attention(q, k, v, bias, wo_off, bo_row):
        """Block-diagonal MHA for all batches & heads at once.

        q (BN, D), k/v (Nk, D) f32; rows of the head-expanded block are ordered
        (head, batch, token).  hmask keeps only head-h features in row-block h;
        bias (HBN, Nk) is the precomputed batch-block + key-padding additive mask.
        The 1/sqrt(dh) scale is already folded into Wq/bq.
        """
        q_bd = jnp.concatenate([q] * HEADS, axis=0) * hmask           # (HBN, D) f32
        s = _dot_nt(q_bd.astype(bf16), k.astype(bf16)) + bias         # (HBN, Nk) f32
        s = s - jnp.max(s, axis=-1, keepdims=True)                    # => denom >= 1
        p = jnp.exp(s)
        p = p * pl.reciprocal(jnp.sum(p, axis=-1, keepdims=True), approx=True)
        o = _dot(p.astype(bf16), v.astype(bf16)) * hmask              # (HBN, D) f32
        o_cat = o[0:BN]                                               # concat heads
        for h in range(1, HEADS):
            o_cat = o_cat + o[h * BN:(h + 1) * BN]
        return _dot(o_cat.astype(bf16), wcols(wo_off, D)) + brow(bo_row, D)

    # ---- self-attention: x = x + MHA(LN(x))   (LN affine, scale, LayerScale folded) ----
    h = _layernorm(x).astype(bf16)
    qkv = _dot(h, wcols(OFF_QKV_S, 3 * D)) + brow(ROW_BQKV_S, 3 * D)  # fused QKV + bias
    q, k, v = qkv[:, 0:D], qkv[:, D:2 * D], qkv[:, 2 * D:3 * D]
    x = x + attention(q, k, v, bself_ref[...], OFF_WO_S, ROW_BO_S)

    # ---- conditional cross-attention: q from LN(x), k/v from cond ----
    h = _layernorm(x).astype(bf16)
    q = _dot(h, wcols(OFF_WQ_C, D)) + brow(ROW_BQ_C, D)
    kv = _dot(cond_ref[...], wcols(OFF_WKV_C, 2 * D)) + brow(ROW_BKV_C, 2 * D)
    k, v = kv[:, 0:D], kv[:, D:2 * D]
    x = x + attention(q, k, v, bcond_ref[...], OFF_WO_C, ROW_BO_C)

    # ---- feed-forward: x = x + W2' @ gelu(W1' @ LN(x)) ----
    h = _layernorm(x).astype(bf16)
    h = _dot(h, wcols(OFF_W1, FF_HIDDEN)) + brow(ROW_B1, FF_HIDDEN)
    # TODO(synk): PyTorch nn.GELU defaults to exact erf; tanh approximation used here.
    h = jax.nn.gelu(h)
    h = _dot_nt(h.astype(bf16), wcols(OFF_W2T, FF_HIDDEN)) + brow(ROW_B2, D)
    x = x + h

    o_ref[...] = x


# ---------------- host-side static masks ----------------
def _static_masks():
    r = np.arange(HBN)
    head_mask = (r[:, None] // BN == np.arange(D)[None, :] // DH).astype(np.float32)
    rb = (r // N) % B                                       # batch of each query row
    blk_self = np.where(rb[:, None] == (np.arange(BN) // N)[None, :], 0.0, NEG)
    blk_cond = np.where(rb[:, None] == (np.arange(BM) // M)[None, :], 0.0, NEG)
    return head_mask, blk_self.astype(np.float32), blk_cond.astype(np.float32)


_HEAD_MASK, _BLK_SELF, _BLK_COND = _static_masks()


# ---------------- wrapper ----------------
@jax.jit
def transformer_stack(x, mask, cond, mask_cond, packed):
    """Applies NUM_LAYERS SingleTransformer blocks (params stacked on axis 0)."""
    wbig, bvec = packed                                  # (L,D,512) bf16, (L,8,128) f32
    num_layers = wbig.shape[0]

    xf = x.reshape(BN, D).astype(jnp.float32)
    cf = cond.reshape(BM, D).astype(jnp.bfloat16)        # cond only feeds bf16 matmuls
    # combined additive attention biases: static batch-block mask + runtime key padding
    bias_self = _BLK_SELF + jnp.where(mask.reshape(1, BN), 0.0, NEG).astype(jnp.float32)
    bias_cond = _BLK_COND + jnp.where(mask_cond.reshape(1, BM), 0.0, NEG).astype(jnp.float32)

    out = pl.pallas_call(
        transformer_kernel,
        out_shape=jax.ShapeDtypeStruct((BN, D), jnp.float32),
        grid_spec=pltpu.PrefetchScalarGridSpec(
            num_scalar_prefetch=0,
            grid=(num_layers,),
            in_specs=[
                pl.BlockSpec((BN, D), lambda l: (0, 0)),          # x (read once)
                pl.BlockSpec((BM, D), lambda l: (0, 0)),          # cond
                pl.BlockSpec((HBN, D), lambda l: (0, 0)),         # head mask
                pl.BlockSpec((HBN, BN), lambda l: (0, 0)),        # self-attn bias
                pl.BlockSpec((HBN, BM), lambda l: (0, 0)),        # cross-attn bias
                pl.BlockSpec((None, D, WCOLS), lambda l: (l, 0, 0)),   # per-layer weights
                pl.BlockSpec((None, 8, 128), lambda l: (l, 0, 0)),     # per-layer biases
            ],
            out_specs=pl.BlockSpec((BN, D), lambda l: (0, 0)),    # resident residual
        ),
        compiler_params=pltpu.CompilerParams(dimension_semantics=("arbitrary",)),
    )(xf, cf, jnp.asarray(_HEAD_MASK), bias_self, bias_cond, wbig, bvec)
    return out.reshape(B, N, D)


# ---------------- parameter init (shapes from the module __init__) ----------------
def init_layer(key):
    keys = iter(jax.random.split(key, 32))

    def w(shape, scale=0.02):
        return scale * jax.random.normal(next(keys), shape, dtype=jnp.float32)

    ones = lambda s: jnp.ones(s, jnp.float32)
    zeros = lambda s: jnp.zeros(s, jnp.float32)
    ls = jnp.full((1, D), LS_INIT, jnp.float32)   # LayerScale: zeros(1,1,dim).fill_(init_eps)

    def attn_block():  # Wq, bq, Wk, bk, Wv, bv, Wo, bo
        return (w((D, D)), w((1, D)), w((D, D)), w((1, D)),
                w((D, D)), w((1, D)), w((D, D)), w((1, D)))

    return [
        ones((1, D)), zeros((1, D)), *attn_block(), ls,          # atten_norm / attention / scale
        ones((1, D)), zeros((1, D)), *attn_block(), ls,          # cond branch
        ones((1, D)), zeros((1, D)),
        w((D, FF_HIDDEN)), w((1, FF_HIDDEN)), w((FF_HIDDEN, D)), w((1, D)), ls,  # ff branch
    ]


def init_params(key, num_layers):
    return [init_layer(k) for k in jax.random.split(key, num_layers)]


def pack_params(layers_params):
    """Fold LN affines, LayerScales and the attention scale into the weights and
    pack each layer into one lane-dense (D,512) bf16 slab + one (8,128) f32 bias slab."""
    wslabs, bslabs = [], []
    for p in layers_params:
        (ln1_g, ln1_b, wq, bq, wk, bk, wv, bv, wo, bo, ls1,
         lnc_g, lnc_b, wqc, bqc, wkc, bkc, wvc, bvc, woc, boc, lsc,
         lnf_g, lnf_b, w1, b1, w2, b2, lsf) = p

        # self-attention: attn scale folded into Wq/bq, LN1 affine folded into QKV
        wqkv = jnp.concatenate([wq * ATTN_SCALE, wk, wv], axis=1)         # (D, 3D)
        bqkv = jnp.concatenate([bq * ATTN_SCALE, bk, bv], axis=1)         # (1, 3D)
        wqkv_f = ln1_g.reshape(D, 1) * wqkv
        bqkv_f = bqkv + ln1_b @ wqkv
        wo_f, bo_f = wo * ls1, bo * ls1                                    # LayerScale fold

        # cross-attention: q path folds LNc affine + scale; k/v come from raw cond
        wqc_s = wqc * ATTN_SCALE
        wqc_f = lnc_g.reshape(D, 1) * wqc_s
        bqc_f = bqc * ATTN_SCALE + lnc_b @ wqc_s
        wkvc = jnp.concatenate([wkc, wvc], axis=1)                         # (D, 2D)
        bkvc = jnp.concatenate([bkc, bvc], axis=1)
        woc_f, boc_f = woc * lsc, boc * lsc

        # feed-forward: LNf affine into W1/b1, LayerScale into W2/b2 (W2 stored transposed)
        w1_f = lnf_g.reshape(D, 1) * w1
        b1_f = b1 + lnf_b @ w1
        w2t_f = (w2 * lsf).T                                               # (D, FF)
        b2_f = b2 * lsf

        wslab = jnp.concatenate([wqkv_f, wo_f, wqc_f, wkvc, woc_f, w1_f, w2t_f], axis=1)
        assert wslab.shape == (D, WCOLS)

        bslab = jnp.zeros((8, 128), jnp.float32)
        bslab = bslab.at[ROW_BQKV_S, 0:3 * D].set(bqkv_f[0])
        bslab = bslab.at[ROW_BKV_C, 0:2 * D].set(bkvc[0])
        bslab = bslab.at[ROW_B1, 0:FF_HIDDEN].set(b1_f[0])
        bslab = bslab.at[ROW_BO_S, 0:D].set(bo_f[0])
        bslab = bslab.at[ROW_BQ_C, 0:D].set(bqc_f[0])
        bslab = bslab.at[ROW_BO_C, 0:D].set(boc_f[0])
        bslab = bslab.at[ROW_B2, 0:D].set(b2_f[0])

        wslabs.append(wslab)
        bslabs.append(bslab)

    wbig = jnp.stack(wslabs).astype(jnp.bfloat16)      # (L, D, 512)
    bvec = jnp.stack(bslabs).astype(jnp.float32)       # (L, 8, 128)
    return wbig, bvec


# ---------------- plain-JAX reference (unfolded, per-head / per-batch) ----------------
def _layernorm_ref(x, g, b):
    mu = jnp.mean(x, axis=-1, keepdims=True)
    var = jnp.mean((x - mu) ** 2, axis=-1, keepdims=True)
    return (x - mu) * jax.lax.rsqrt(var + EPS) * g + b


def _mha_ref(q_in, kv_in, bias, Wq, bq, Wk, bk, Wv, bv, Wo, bo):
    q = jnp.dot(q_in, Wq) + bq
    k = jnp.dot(kv_in, Wk) + bk
    v = jnp.dot(kv_in, Wv) + bv
    out = jnp.zeros((q_in.shape[0], D), jnp.float32) + bo
    for h in range(HEADS):
        sl = slice(h * DH, (h + 1) * DH)
        s = jnp.dot(q[:, sl], k[:, sl].T) * ATTN_SCALE + bias
        s = s - jnp.max(s, axis=-1, keepdims=True)
        p = jnp.exp(s)
        p = p / jnp.sum(p, axis=-1, keepdims=True)
        out = out + jnp.dot(jnp.dot(p, v[:, sl]), Wo[sl, :])
    return out


def layer_reference(x, mask, cond, mask_cond, params):
    (ln1_g, ln1_b, wq, bq, wk, bk, wv, bv, wo, bo, ls1,
     lnc_g, lnc_b, wqc, bqc, wkc, bkc, wvc, bvc, woc, boc, lsc,
     lnf_g, lnf_b, w1, b1, w2, b2, lsf) = params

    def one(xb, mb, cb, mcb):
        bias_self = jnp.where(mb, 0.0, NEG)[None, :]
        bias_cond = jnp.where(mcb, 0.0, NEG)[None, :]
        h = _layernorm_ref(xb, ln1_g, ln1_b)
        att = _mha_ref(h, h, bias_self, wq, bq, wk, bk, wv, bv, wo, bo)
        xb = xb + att * ls1
        h = _layernorm_ref(xb, lnc_g, lnc_b)
        att = _mha_ref(h, cb, bias_cond, wqc, bqc, wkc, bkc, wvc, bvc, woc, boc)
        xb = xb + att * lsc
        h = _layernorm_ref(xb, lnf_g, lnf_b)
        h = jnp.dot(h, w1) + b1
        h = jax.nn.gelu(h)
        h = jnp.dot(h, w2) + b2
        return xb + h * lsf

    return jax.vmap(one)(x, mask, cond, mask_cond)


def stack_reference(x, mask, cond, mask_cond, layers_params):
    for p in layers_params:
        x = layer_reference(x, mask, cond, mask_cond, p)
    return x


if __name__ == "__main__":
    key = jax.random.PRNGKey(0)
    kx, kc, kp = jax.random.split(key, 3)
    x = jax.random.normal(kx, (B, N, D), jnp.float32)
    cond = jax.random.normal(kc, (B, M, D), jnp.float32)
    # key-padding masks: True = attend (pad a few keys, never a whole row)
    mask = jnp.ones((B, N), bool).at[1, N - 2:].set(False)
    mask_cond = jnp.ones((B, M), bool).at[0, M - 3:].set(False)

    raw_params = init_params(kp, NUM_LAYERS)
    packed = pack_params(raw_params)

    out = transformer_stack(x, mask, cond, mask_cond, packed)
    out = jax.block_until_ready(out)

    ref = stack_reference(x, mask, cond, mask_cond, raw_params)
    np.testing.assert_allclose(np.asarray(out), np.asarray(ref), rtol=2e-2, atol=2e-2)

    print("KERNEL_OK")
</pallas_src>

<mosaic_0001>
module attributes {stable_mosaic.version = 11 : i64} {
  func.func @transformer_kernel(%arg0: i32, %arg1: memref<16x32xf32, #tpu.memory_space<vmem>>, %arg2: memref<16x32xbf16, #tpu.memory_space<vmem>>, %arg3: memref<64x32xf32, #tpu.memory_space<vmem>>, %arg4: memref<64x16xf32, #tpu.memory_space<vmem>>, %arg5: memref<64x16xf32, #tpu.memory_space<vmem>>, %arg6: memref<1x32x512xbf16, #tpu.memory_space<vmem>>, %arg7: memref<1x8x128xf32, #tpu.memory_space<vmem>>, %arg8: memref<16x32xf32, #tpu.memory_space<vmem>>) attributes {dimension_semantics = [#tpu.dimension_semantics<arbitrary>], iteration_bounds = array<i64: 12>, scalar_prefetch = 0 : i64, scratch_operands = 0 : i64, tpu.core_type = #tpu.core_type<tc>, window_params = [{pipeline_mode = #tpu.pipeline_mode<synchronous>, transform_indices = @transform_0, window_bounds = array<i64: 16, 32>}, {pipeline_mode = #tpu.pipeline_mode<synchronous>, transform_indices = @transform_1, window_bounds = array<i64: 16, 32>}, {pipeline_mode = #tpu.pipeline_mode<synchronous>, transform_indices = @transform_2, window_bounds = array<i64: 64, 32>}, {pipeline_mode = #tpu.pipeline_mode<synchronous>, transform_indices = @transform_3, window_bounds = array<i64: 64, 16>}, {pipeline_mode = #tpu.pipeline_mode<synchronous>, transform_indices = @transform_4, window_bounds = array<i64: 64, 16>}, {transform_indices = @transform_5, window_bounds = array<i64: 1, 32, 512>}, {transform_indices = @transform_6, window_bounds = array<i64: 1, 8, 128>}, {pipeline_mode = #tpu.pipeline_mode<synchronous>, transform_indices = @transform_7, window_bounds = array<i64: 16, 32>}]} {
    %c0_i32 = arith.constant 0 : i32
    %0 = arith.cmpi eq, %arg0, %c0_i32 : i32
    %1 = arith.extui %0 : i1 to i32
    %c0_i32_0 = arith.constant 0 : i32
    %2 = arith.cmpi ne, %1, %c0_i32_0 : i32
    scf.if %2 {
      %c0_75 = arith.constant 0 : index
      %c0_76 = arith.constant 0 : index
      %187 = vector.load %arg1[%c0_75, %c0_76] : memref<16x32xf32, #tpu.memory_space<vmem>>, vector<16x32xf32>
      %c0_77 = arith.constant 0 : index
      %c0_78 = arith.constant 0 : index
      %188 = vector.load %arg8[%c0_77, %c0_78] : memref<16x32xf32, #tpu.memory_space<vmem>>, vector<16x32xf32>
      tpu.vector_store %arg8[%c0_77, %c0_78], %187 {strides = array<i32>} : memref<16x32xf32, #tpu.memory_space<vmem>>, vector<16x32xf32>,
    } else {
    }
    %c0 = arith.constant 0 : index
    %c0_1 = arith.constant 0 : index
    %3 = vector.load %arg8[%c0, %c0_1] : memref<16x32xf32, #tpu.memory_space<vmem>>, vector<16x32xf32>
    %c0_2 = arith.constant 0 : index
    %c0_3 = arith.constant 0 : index
    %4 = vector.load %arg3[%c0_2, %c0_3] : memref<64x32xf32, #tpu.memory_space<vmem>>, vector<64x32xf32>
    %cst = arith.constant dense<0.000000e+00> : vector<16xf32>
    %5 = vector.multi_reduction <add>, %3, %cst [1] : vector<16x32xf32> to vector<16xf32>
    %6 = vector.shape_cast %5 : vector<16xf32> to vector<16x1xf32>
    %cst_4 = arith.constant 3.200000e+01 : f32
    %7 = vector.broadcast %cst_4 : f32 to vector<16x1xf32>
    %8 = arith.divf %6, %7 : vector<16x1xf32>
    %9 = vector.broadcast %8 : vector<16x1xf32> to vector<16x32xf32>
    %10 = arith.subf %3, %9 : vector<16x32xf32>
    %11 = arith.mulf %10, %10 : vector<16x32xf32>
    %cst_5 = arith.constant dense<0.000000e+00> : vector<16xf32>
    %12 = vector.multi_reduction <add>, %11, %cst_5 [1] : vector<16x32xf32> to vector<16xf32>
    %13 = vector.shape_cast %12 : vector<16xf32> to vector<16x1xf32>
    %cst_6 = arith.constant 3.200000e+01 : f32
    %14 = vector.broadcast %cst_6 : f32 to vector<16x1xf32>
    %15 = arith.divf %13, %14 : vector<16x1xf32>
    %cst_7 = arith.constant 9.99999974E-6 : f32
    %16 = vector.broadcast %cst_7 : f32 to vector<16x1xf32>
    %17 = arith.addf %15, %16 : vector<16x1xf32>
    %18 = math.rsqrt %17 : vector<16x1xf32>
    %19 = vector.broadcast %18 : vector<16x1xf32> to vector<16x32xf32>
    %20 = arith.mulf %10, %19 : vector<16x32xf32>
    %21 = arith.truncf %20 : vector<16x32xf32> to vector<16x32xbf16>
    %c0_8 = arith.constant 0 : index
    %c0_9 = arith.constant 0 : index
    %c0_10 = arith.constant 0 : index
    %22 = vector.load %arg6[%c0_8, %c0_9, %c0_10] : memref<1x32x512xbf16, #tpu.memory_space<vmem>>, vector<1x32x96xbf16>
    %23 = vector.shape_cast %22 : vector<1x32x96xbf16> to vector<32x96xbf16>
    %cst_11 = arith.constant dense<0.000000e+00> : vector<16x96xf32>
    %24 = tpu.matmul %21, %23, %cst_11 {dimension_numbers = #tpu.dot_dimension_numbers<[1], [0], [0], [1], [0, 0, 1, 1], [], []>} : vector<16x32xbf16>, vector<32x96xbf16>, vector<16x96xf32> -> vector<16x96xf32>
    %c0_12 = arith.constant 0 : index
    %c0_13 = arith.constant 0 : index
    %c0_14 = arith.constant 0 : index
    %25 = vector.load %arg7[%c0_12, %c0_13, %c0_14] : memref<1x8x128xf32, #tpu.memory_space<vmem>>, vector<1x1x96xf32>
    %26 = vector.shape_cast %25 : vector<1x1x96xf32> to vector<1x96xf32>
    %27 = vector.broadcast %26 : vector<1x96xf32> to vector<16x96xf32>
    %28 = arith.addf %24, %27 : vector<16x96xf32>
    %29 = vector.extract_strided_slice %28 {offsets = [0, 0], sizes = [16, 32], strides = [1, 1]} : vector<16x96xf32> to vector<16x32xf32>
    %30 = vector.extract_strided_slice %28 {offsets = [0, 32], sizes = [16, 32], strides = [1, 1]} : vector<16x96xf32> to vector<16x32xf32>
    %31 = vector.extract_strided_slice %28 {offsets = [0, 64], sizes = [16, 32], strides = [1, 1]} : vector<16x96xf32> to vector<16x32xf32>
    %c0_15 = arith.constant 0 : index
    %c0_16 = arith.constant 0 : index
    %32 = vector.load %arg4[%c0_15, %c0_16] : memref<64x16xf32, #tpu.memory_space<vmem>>, vector<64x16xf32>
    %33 = tpu.concatenate %29, %29, %29, %29 in 0 : vector<16x32xf32>, vector<16x32xf32>, vector<16x32xf32>, vector<16x32xf32> -> vector<64x32xf32>
    %34 = arith.mulf %33, %4 : vector<64x32xf32>
    %35 = arith.truncf %34 : vector<64x32xf32> to vector<64x32xbf16>
    %36 = arith.truncf %30 : vector<16x32xf32> to vector<16x32xbf16>
    %cst_17 = arith.constant dense<0.000000e+00> : vector<64x16xf32>
    %37 = tpu.matmul %35, %36, %cst_17 {dimension_numbers = #tpu.dot_dimension_numbers<[1], [1], [0], [0], [0, 0, 1, 0], [], []>} : vector<64x32xbf16>, vector<16x32xbf16>, vector<64x16xf32> -> vector<64x16xf32>
    %38 = arith.addf %37, %32 : vector<64x16xf32>
    %cst_18 = arith.constant dense<0xFF800000> : vector<64xf32>
    %39 = vector.multi_reduction <maximumf>, %38, %cst_18 [1] : vector<64x16xf32> to vector<64xf32>
    %40 = vector.shape_cast %39 : vector<64xf32> to vector<64x1xf32>
    %41 = vector.broadcast %40 : vector<64x1xf32> to vector<64x16xf32>
    %42 = arith.subf %38, %41 : vector<64x16xf32>
    %43 = math.exp %42 : vector<64x16xf32>
    %cst_19 = arith.constant dense<0.000000e+00> : vector<64xf32>
    %44 = vector.multi_reduction <add>, %43, %cst_19 [1] : vector<64x16xf32> to vector<64xf32>
    %45 = vector.shape_cast %44 : vector<64xf32> to vector<64x1xf32>
    %46 = tpu.reciprocal %45 {approx = true} : vector<64x1xf32> -> vector<64x1xf32>
    %47 = vector.broadcast %46 : vector<64x1xf32> to vector<64x16xf32>
    %48 = arith.mulf %43, %47 : vector<64x16xf32>
    %49 = arith.truncf %48 : vector<64x16xf32> to vector<64x16xbf16>
    %50 = arith.truncf %31 : vector<16x32xf32> to vector<16x32xbf16>
    %cst_20 = arith.constant dense<0.000000e+00> : vector<64x32xf32>
    %51 = tpu.matmul %49, %50, %cst_20 {dimension_numbers = #tpu.dot_dimension_numbers<[1], [0], [0], [1], [0, 0, 1, 1], [], []>} : vector<64x16xbf16>, vector<16x32xbf16>, vector<64x32xf32> -> vector<64x32xf32>
    %52 = arith.mulf %51, %4 : vector<64x32xf32>
    %53 = vector.extract_strided_slice %52 {offsets = [0, 0], sizes = [16, 32], strides = [1, 1]} : vector<64x32xf32> to vector<16x32xf32>
    %54 = vector.extract_strided_slice %52 {offsets = [16, 0], sizes = [16, 32], strides = [1, 1]} : vector<64x32xf32> to vector<16x32xf32>
    %55 = arith.addf %53, %54 : vector<16x32xf32>
    %56 = vector.extract_strided_slice %52 {offsets = [32, 0], sizes = [16, 32], strides = [1, 1]} : vector<64x32xf32> to vector<16x32xf32>
    %57 = arith.addf %55, %56 : vector<16x32xf32>
    %58 = vector.extract_strided_slice %52 {offsets = [48, 0], sizes = [16, 32], strides = [1, 1]} : vector<64x32xf32> to vector<16x32xf32>
    %59 = arith.addf %57, %58 : vector<16x32xf32>
    %60 = arith.truncf %59 : vector<16x32xf32> to vector<16x32xbf16>
    %c0_21 = arith.constant 0 : index
    %c0_22 = arith.constant 0 : index
    %c96 = arith.constant 96 : index
    %61 = vector.load %arg6[%c0_21, %c0_22, %c96] : memref<1x32x512xbf16, #tpu.memory_space<vmem>>, vector<1x32x32xbf16>
    %62 = vector.shape_cast %61 : vector<1x32x32xbf16> to vector<32x32xbf16>
    %cst_23 = arith.constant dense<0.000000e+00> : vector<16x32xf32>
    %63 = tpu.matmul %60, %62, %cst_23 {dimension_numbers = #tpu.dot_dimension_numbers<[1], [0], [0], [1], [0, 0, 1, 1], [], []>} : vector<16x32xbf16>, vector<32x32xbf16>, vector<16x32xf32> -> vector<16x32xf32>
    %c0_24 = arith.constant 0 : index
    %c3 = arith.constant 3 : index
    %c0_25 = arith.constant 0 : index
    %64 = vector.load %arg7[%c0_24, %c3, %c0_25] : memref<1x8x128xf32, #tpu.memory_space<vmem>>, vector<1x1x32xf32>
    %65 = vector.shape_cast %64 : vector<1x1x32xf32> to vector<1x32xf32>
    %66 = vector.broadcast %65 : vector<1x32xf32> to vector<16x32xf32>
    %67 = arith.addf %63, %66 : vector<16x32xf32>
    %68 = arith.addf %3, %67 : vector<16x32xf32>
    %cst_26 = arith.constant dense<0.000000e+00> : vector<16xf32>
    %69 = vector.multi_reduction <add>, %68, %cst_26 [1] : vector<16x32xf32> to vector<16xf32>
    %70 = vector.shape_cast %69 : vector<16xf32> to vector<16x1xf32>
    %cst_27 = arith.constant 3.200000e+01 : f32
    %71 = vector.broadcast %cst_27 : f32 to vector<16x1xf32>
    %72 = arith.divf %70, %71 : vector<16x1xf32>
    %73 = vector.broadcast %72 : vector<16x1xf32> to vector<16x32xf32>
    %74 = arith.subf %68, %73 : vector<16x32xf32>
    %75 = arith.mulf %74, %74 : vector<16x32xf32>
    %cst_28 = arith.constant dense<0.000000e+00> : vector<16xf32>
    %76 = vector.multi_reduction <add>, %75, %cst_28 [1] : vector<16x32xf32> to vector<16xf32>
    %77 = vector.shape_cast %76 : vector<16xf32> to vector<16x1xf32>
    %cst_29 = arith.constant 3.200000e+01 : f32
    %78 = vector.broadcast %cst_29 : f32 to vector<16x1xf32>
    %79 = arith.divf %77, %78 : vector<16x1xf32>
    %cst_30 = arith.constant 9.99999974E-6 : f32
    %80 = vector.broadcast %cst_30 : f32 to vector<16x1xf32>
    %81 = arith.addf %79, %80 : vector<16x1xf32>
    %82 = math.rsqrt %81 : vector<16x1xf32>
    %83 = vector.broadcast %82 : vector<16x1xf32> to vector<16x32xf32>
    %84 = arith.mulf %74, %83 : vector<16x32xf32>
    %85 = arith.truncf %84 : vector<16x32xf32> to vector<16x32xbf16>
    %c0_31 = arith.constant 0 : index
    %c0_32 = arith.constant 0 : index
    %c128 = arith.constant 128 : index
    %86 = vector.load %arg6[%c0_31, %c0_32, %c128] : memref<1x32x512xbf16, #tpu.memory_space<vmem>>, vector<1x32x32xbf16>
    %87 = vector.shape_cast %86 : vector<1x32x32xbf16> to vector<32x32xbf16>
    %cst_33 = arith.constant dense<0.000000e+00> : vector<16x32xf32>
    %88 = tpu.matmul %85, %87, %cst_33 {dimension_numbers = #tpu.dot_dimension_numbers<[1], [0], [0], [1], [0, 0, 1, 1], [], []>} : vector<16x32xbf16>, vector<32x32xbf16>, vector<16x32xf32> -> vector<16x32xf32>
    %c0_34 = arith.constant 0 : index
    %c4 = arith.constant 4 : index
    %c0_35 = arith.constant 0 : index
    %89 = vector.load %arg7[%c0_34, %c4, %c0_35] : memref<1x8x128xf32, #tpu.memory_space<vmem>>, vector<1x1x32xf32>
    %90 = vector.shape_cast %89 : vector<1x1x32xf32> to vector<1x32xf32>
    %91 = vector.broadcast %90 : vector<1x32xf32> to vector<16x32xf32>
    %92 = arith.addf %88, %91 : vector<16x32xf32>
    %c0_36 = arith.constant 0 : index
    %c0_37 = arith.constant 0 : index
    %93 = vector.load %arg2[%c0_36, %c0_37] : memref<16x32xbf16, #tpu.memory_space<vmem>>, vector<16x32xbf16>
    %c0_38 = arith.constant 0 : index
    %c0_39 = arith.constant 0 : index
    %c160 = arith.constant 160 : index
    %94 = vector.load %arg6[%c0_38, %c0_39, %c160] : memref<1x32x512xbf16, #tpu.memory_space<vmem>>, vector<1x32x64xbf16>
    %95 = vector.shape_cast %94 : vector<1x32x64xbf16> to vector<32x64xbf16>
    %cst_40 = arith.constant dense<0.000000e+00> : vector<16x64xf32>
    %96 = tpu.matmul %93, %95, %cst_40 {dimension_numbers = #tpu.dot_dimension_numbers<[1], [0], [0], [1], [0, 0, 1, 1], [], []>} : vector<16x32xbf16>, vector<32x64xbf16>, vector<16x64xf32> -> vector<16x64xf32>
    %c0_41 = arith.constant 0 : index
    %c1 = arith.constant 1 : index
    %c0_42 = arith.constant 0 : index
    %97 = vector.load %arg7[%c0_41, %c1, %c0_42] : memref<1x8x128xf32, #tpu.memory_space<vmem>>, vector<1x1x64xf32>
    %98 = vector.shape_cast %97 : vector<1x1x64xf32> to vector<1x64xf32>
    %99 = vector.broadcast %98 : vector<1x64xf32> to vector<16x64xf32>
    %100 = arith.addf %96, %99 : vector<16x64xf32>
    %101 = vector.extract_strided_slice %100 {offsets = [0, 0], sizes = [16, 32], strides = [1, 1]} : vector<16x64xf32> to vector<16x32xf32>
    %102 = vector.extract_strided_slice %100 {offsets = [0, 32], sizes = [16, 32], strides = [1, 1]} : vector<16x64xf32> to vector<16x32xf32>
    %c0_43 = arith.constant 0 : index
    %c0_44 = arith.constant 0 : index
    %103 = vector.load %arg5[%c0_43, %c0_44] : memref<64x16xf32, #tpu.memory_space<vmem>>, vector<64x16xf32>
    %104 = tpu.concatenate %92, %92, %92, %92 in 0 : vector<16x32xf32>, vector<16x32xf32>, vector<16x32xf32>, vector<16x32xf32> -> vector<64x32xf32>
    %105 = arith.mulf %104, %4 : vector<64x32xf32>
    %106 = arith.truncf %105 : vector<64x32xf32> to vector<64x32xbf16>
    %107 = arith.truncf %101 : vector<16x32xf32> to vector<16x32xbf16>
    %cst_45 = arith.constant dense<0.000000e+00> : vector<64x16xf32>
    %108 = tpu.matmul %106, %107, %cst_45 {dimension_numbers = #tpu.dot_dimension_numbers<[1], [1], [0], [0], [0, 0, 1, 0], [], []>} : vector<64x32xbf16>, vector<16x32xbf16>, vector<64x16xf32> -> vector<64x16xf32>
    %109 = arith.addf %108, %103 : vector<64x16xf32>
    %cst_46 = arith.constant dense<0xFF800000> : vector<64xf32>
    %110 = vector.multi_reduction <maximumf>, %109, %cst_46 [1] : vector<64x16xf32> to vector<64xf32>
    %111 = vector.shape_cast %110 : vector<64xf32> to vector<64x1xf32>
    %112 = vector.broadcast %111 : vector<64x1xf32> to vector<64x16xf32>
    %113 = arith.subf %109, %112 : vector<64x16xf32>
    %114 = math.exp %113 : vector<64x16xf32>
    %cst_47 = arith.constant dense<0.000000e+00> : vector<64xf32>
    %115 = vector.multi_reduction <add>, %114, %cst_47 [1] : vector<64x16xf32> to vector<64xf32>
    %116 = vector.shape_cast %115 : vector<64xf32> to vector<64x1xf32>
    %117 = tpu.reciprocal %116 {approx = true} : vector<64x1xf32> -> vector<64x1xf32>
    %118 = vector.broadcast %117 : vector<64x1xf32> to vector<64x16xf32>
    %119 = arith.mulf %114, %118 : vector<64x16xf32>
    %120 = arith.truncf %119 : vector<64x16xf32> to vector<64x16xbf16>
    %121 = arith.truncf %102 : vector<16x32xf32> to vector<16x32xbf16>
    %cst_48 = arith.constant dense<0.000000e+00> : vector<64x32xf32>
    %122 = tpu.matmul %120, %121, %cst_48 {dimension_numbers = #tpu.dot_dimension_numbers<[1], [0], [0], [1], [0, 0, 1, 1], [], []>} : vector<64x16xbf16>, vector<16x32xbf16>, vector<64x32xf32> -> vector<64x32xf32>
    %123 = arith.mulf %122, %4 : vector<64x32xf32>
    %124 = vector.extract_strided_slice %123 {offsets = [0, 0], sizes = [16, 32], strides = [1, 1]} : vector<64x32xf32> to vector<16x32xf32>
    %125 = vector.extract_strided_slice %123 {offsets = [16, 0], sizes = [16, 32], strides = [1, 1]} : vector<64x32xf32> to vector<16x32xf32>
    %126 = arith.addf %124, %125 : vector<16x32xf32>
    %127 = vector.extract_strided_slice %123 {offsets = [32, 0], sizes = [16, 32], strides = [1, 1]} : vector<64x32xf32> to vector<16x32xf32>
    %128 = arith.addf %126, %127 : vector<16x32xf32>
    %129 = vector.extract_strided_slice %123 {offsets = [48, 0], sizes = [16, 32], strides = [1, 1]} : vector<64x32xf32> to vector<16x32xf32>
    %130 = arith.addf %128, %129 : vector<16x32xf32>
    %131 = arith.truncf %130 : vector<16x32xf32> to vector<16x32xbf16>
    %c0_49 = arith.constant 0 : index
    %c0_50 = arith.constant 0 : index
    %c224 = arith.constant 224 : index
    %132 = vector.load %arg6[%c0_49, %c0_50, %c224] : memref<1x32x512xbf16, #tpu.memory_space<vmem>>, vector<1x32x32xbf16>
    %133 = vector.shape_cast %132 : vector<1x32x32xbf16> to vector<32x32xbf16>
    %cst_51 = arith.constant dense<0.000000e+00> : vector<16x32xf32>
    %134 = tpu.matmul %131, %133, %cst_51 {dimension_numbers = #tpu.dot_dimension_numbers<[1], [0], [0], [1], [0, 0, 1, 1], [], []>} : vector<16x32xbf16>, vector<32x32xbf16>, vector<16x32xf32> -> vector<16x32xf32>
    %c0_52 = arith.constant 0 : index
    %c5 = arith.constant 5 : index
    %c0_53 = arith.constant 0 : index
    %135 = vector.load %arg7[%c0_52, %c5, %c0_53] : memref<1x8x128xf32, #tpu.memory_space<vmem>>, vector<1x1x32xf32>
    %136 = vector.shape_cast %135 : vector<1x1x32xf32> to vector<1x32xf32>
    %137 = vector.broadcast %136 : vector<1x32xf32> to vector<16x32xf32>
    %138 = arith.addf %134, %137 : vector<16x32xf32>
    %139 = arith.addf %68, %138 : vector<16x32xf32>
    %cst_54 = arith.constant dense<0.000000e+00> : vector<16xf32>
    %140 = vector.multi_reduction <add>, %139, %cst_54 [1] : vector<16x32xf32> to vector<16xf32>
    %141 = vector.shape_cast %140 : vector<16xf32> to vector<16x1xf32>
    %cst_55 = arith.constant 3.200000e+01 : f32
    %142 = vector.broadcast %cst_55 : f32 to vector<16x1xf32>
    %143 = arith.divf %141, %142 : vector<16x1xf32>
    %144 = vector.broadcast %143 : vector<16x1xf32> to vector<16x32xf32>
    %145 = arith.subf %139, %144 : vector<16x32xf32>
    %146 = arith.mulf %145, %145 : vector<16x32xf32>
    %cst_56 = arith.constant dense<0.000000e+00> : vector<16xf32>
    %147 = vector.multi_reduction <add>, %146, %cst_56 [1] : vector<16x32xf32> to vector<16xf32>
    %148 = vector.shape_cast %147 : vector<16xf32> to vector<16x1xf32>
    %cst_57 = arith.constant 3.200000e+01 : f32
    %149 = vector.broadcast %cst_57 : f32 to vector<16x1xf32>
    %150 = arith.divf %148, %149 : vector<16x1xf32>
    %cst_58 = arith.constant 9.99999974E-6 : f32
    %151 = vector.broadcast %cst_58 : f32 to vector<16x1xf32>
    %152 = arith.addf %150, %151 : vector<16x1xf32>
    %153 = math.rsqrt %152 : vector<16x1xf32>
    %154 = vector.broadcast %153 : vector<16x1xf32> to vector<16x32xf32>
    %155 = arith.mulf %145, %154 : vector<16x32xf32>
    %156 = arith.truncf %155 : vector<16x32xf32> to vector<16x32xbf16>
    %c0_59 = arith.constant 0 : index
    %c0_60 = arith.constant 0 : index
    %c256 = arith.constant 256 : index
    %157 = vector.load %arg6[%c0_59, %c0_60, %c256] : memref<1x32x512xbf16, #tpu.memory_space<vmem>>, vector<1x32x128xbf16>
    %158 = vector.shape_cast %157 : vector<1x32x128xbf16> to vector<32x128xbf16>
    %cst_61 = arith.constant dense<0.000000e+00> : vector<16x128xf32>
    %159 = tpu.matmul %156, %158, %cst_61 {dimension_numbers = #tpu.dot_dimension_numbers<[1], [0], [0], [1], [0, 0, 1, 1], [], []>} : vector<16x32xbf16>, vector<32x128xbf16>, vector<16x128xf32> -> vector<16x128xf32>
    %c0_62 = arith.constant 0 : index
    %c2 = arith.constant 2 : index
    %c0_63 = arith.constant 0 : index
    %160 = vector.load %arg7[%c0_62, %c2, %c0_63] : memref<1x8x128xf32, #tpu.memory_space<vmem>>, vector<1x1x128xf32>
    %161 = vector.shape_cast %160 : vector<1x1x128xf32> to vector<1x128xf32>
    %162 = vector.broadcast %161 : vector<1x128xf32> to vector<16x128xf32>
    %163 = arith.addf %159, %162 : vector<16x128xf32>
    %164 = arith.mulf %163, %163 : vector<16x128xf32>
    %165 = arith.mulf %163, %164 : vector<16x128xf32>
    %cst_64 = arith.constant 4.471500e-02 : f32
    %166 = vector.broadcast %cst_64 : f32 to vector<16x128xf32>
    %167 = arith.mulf %166, %165 : vector<16x128xf32>
    %168 = arith.addf %163, %167 : vector<16x128xf32>
    %cst_65 = arith.constant 0.797884583 : f32
    %169 = vector.broadcast %cst_65 : f32 to vector<16x128xf32>
    %170 = arith.mulf %169, %168 : vector<16x128xf32>
    %171 = math.tanh %170 : vector<16x128xf32>
    %cst_66 = arith.constant 1.000000e+00 : f32
    %172 = vector.broadcast %cst_66 : f32 to vector<16x128xf32>
    %173 = arith.addf %172, %171 : vector<16x128xf32>
    %cst_67 = arith.constant 5.000000e-01 : f32
    %174 = vector.broadcast %cst_67 : f32 to vector<16x128xf32>
    %175 = arith.mulf %174, %173 : vector<16x128xf32>
    %176 = arith.mulf %163, %175 : vector<16x128xf32>
    %177 = arith.truncf %176 : vector<16x128xf32> to vector<16x128xbf16>
    %c0_68 = arith.constant 0 : index
    %c0_69 = arith.constant 0 : index
    %c384 = arith.constant 384 : index
    %178 = vector.load %arg6[%c0_68, %c0_69, %c384] : memref<1x32x512xbf16, #tpu.memory_space<vmem>>, vector<1x32x128xbf16>
    %179 = vector.shape_cast %178 : vector<1x32x128xbf16> to vector<32x128xbf16>
    %cst_70 = arith.constant dense<0.000000e+00> : vector<16x32xf32>
    %180 = tpu.matmul %177, %179, %cst_70 {dimension_numbers = #tpu.dot_dimension_numbers<[1], [1], [0], [0], [0, 0, 1, 0], [], []>} : vector<16x128xbf16>, vector<32x128xbf16>, vector<16x32xf32> -> vector<16x32xf32>
    %c0_71 = arith.constant 0 : index
    %c6 = arith.constant 6 : index
    %c0_72 = arith.constant 0 : index
    %181 = vector.load %arg7[%c0_71, %c6, %c0_72] : memref<1x8x128xf32, #tpu.memory_space<vmem>>, vector<1x1x32xf32>
    %182 = vector.shape_cast %181 : vector<1x1x32xf32> to vector<1x32xf32>
    %183 = vector.broadcast %182 : vector<1x32xf32> to vector<16x32xf32>
    %184 = arith.addf %180, %183 : vector<16x32xf32>
    %185 = arith.addf %139, %184 : vector<16x32xf32>
    %c0_73 = arith.constant 0 : index
    %c0_74 = arith.constant 0 : index
    %186 = vector.load %arg8[%c0_73, %c0_74] : memref<16x32xf32, #tpu.memory_space<vmem>>, vector<16x32xf32>
    tpu.vector_store %arg8[%c0_73, %c0_74], %185 {strides = array<i32>} : memref<16x32xf32, #tpu.memory_space<vmem>>, vector<16x32xf32>,
    return
  }
  func.func @transform_0(%arg0: i32) -> (i32, i32) {
    %c0_i32 = arith.constant 0 : i32
    %c0_i32_0 = arith.constant 0 : i32
    %c0_i32_1 = arith.constant 0 : i32
    return %c0_i32, %c0_i32_0 : i32, i32
  }
  func.func @transform_1(%arg0: i32) -> (i32, i32) {
    %c0_i32 = arith.constant 0 : i32
    %c0_i32_0 = arith.constant 0 : i32
    %c0_i32_1 = arith.constant 0 : i32
    return %c0_i32, %c0_i32_0 : i32, i32
  }
  func.func @transform_2(%arg0: i32) -> (i32, i32) {
    %c0_i32 = arith.constant 0 : i32
    %c0_i32_0 = arith.constant 0 : i32
    %c0_i32_1 = arith.constant 0 : i32
    return %c0_i32, %c0_i32_0 : i32, i32
  }
  func.func @transform_3(%arg0: i32) -> (i32, i32) {
    %c0_i32 = arith.constant 0 : i32
    %c0_i32_0 = arith.constant 0 : i32
    %c0_i32_1 = arith.constant 0 : i32
    return %c0_i32, %c0_i32_0 : i32, i32
  }
  func.func @transform_4(%arg0: i32) -> (i32, i32) {
    %c0_i32 = arith.constant 0 : i32
    %c0_i32_0 = arith.constant 0 : i32
    %c0_i32_1 = arith.constant 0 : i32
    return %c0_i32, %c0_i32_0 : i32, i32
  }
  func.func @transform_5(%arg0: i32) -> (i32, i32, i32) {
    %c0_i32 = arith.constant 0 : i32
    %c0_i32_0 = arith.constant 0 : i32
    %c0_i32_1 = arith.constant 0 : i32
    return %arg0, %c0_i32, %c0_i32_0 : i32, i32, i32
  }
  func.func @transform_6(%arg0: i32) -> (i32, i32, i32) {
    %c0_i32 = arith.constant 0 : i32
    %c0_i32_0 = arith.constant 0 : i32
    %c0_i32_1 = arith.constant 0 : i32
    return %arg0, %c0_i32, %c0_i32_0 : i32, i32, i32
  }
  func.func @transform_7(%arg0: i32) -> (i32, i32) {
    %c0_i32 = arith.constant 0 : i32
    %c0_i32_0 = arith.constant 0 : i32
    %c0_i32_1 = arith.constant 0 : i32
    return %c0_i32, %c0_i32_0 : i32, i32
  }
}

</mosaic_0001>

<bundles_post_ra>
// kernel: transformer_stack.1
= control target key start
LH: loop header
LB: loop body
LE: loop exit
PB: predicated region body
PF: predicated region fallthrough
CT: control target
= control target key end

     0   :  { %12 = vsyncpa [#allocation3], 0  ;;  %s2000_s0 = inlined_call_operand.vmem [shape: f32[16,32], index: 0, kind: input, shape index: {}]   ;;  %s2001_s1 = inlined_call_operand.vmem [shape: bf16[16,32], index: 1, kind: input, shape index: {}]   ;;  %s2002_s2 = inlined_call_operand.vmem [shape: f32[64,32], index: 2, kind: input, shape index: {}]   ;;  %s2003_s3 = inlined_call_operand.vmem [shape: f32[64,16], index: 3, kind: input, shape index: {}]   ;;  %s2004_s4 = inlined_call_operand.vmem [shape: f32[64,16], index: 4, kind: input, shape index: {}]   ;;  %s2005_s5 = inlined_call_operand.hbm [shape: bf16[12,32,512], index: 5, kind: input, shape index: {}]   ;;  %s2006_s6 = inlined_call_operand.vmem [shape: f32[12,8,128], index: 6, kind: input, shape index: {}]   ;;  %s2007_s7 = inlined_call_operand.hbm [shape: f32[16,32], index: 7, kind: output, shape index: {}]  }
   0x1   :  { %14 = vsyncpa [#allocation3 + $0x1], 0 }
   0x2   :  { %15 = vsyncpa [#allocation4], 0  ;;  %s1595_s24 = smov 0   ;;  %s1597_s25 = smov 0  }
   0x3   :  { %s1599_s26 = smov 0   ;;  %s1601_s27 = smov 0  }
   0x4 LB: > { %s1614_s28 = sadd.s32 4294967295, %s1544_s27   ;;  %s1617_s29 = sadd.s32 1, %s1544_s27   ;;  %s1544_s27 = sphi %s1601_s27, %s2014_s27   ;;  %s1540_s26 = sphi %s1599_s26, %s2013_s26   ;;  %s1536_s25 = sphi %s1597_s25, %s2012_s25   ;;  %s1532_s24 = sphi %s1595_s24, %s2011_s24  }
   0x5   : > { %s130_s30 = ssub.s32 %s1544_s27, %s1617_s29  ;;  %s133_s8 = sadd.s32 1, %s1540_s26 }
   0x6   : > { %p131_p0 = scmp.eq.s32.totalorder %s130_s30, 0  ;;  %p140_p1 = scmp.ne.s32.totalorder %s1540_s26, %s1536_s25 }
   0x7   : > { %p141_p2 = scmp.eq.s32.totalorder %s1544_s27, 0  ;;  %p146_p3 = scmp.ne.s32.totalorder %s1536_s25, %s1532_s24 }
   0x8   : > { %s1627_s9 = scalar_select %p131_p0, %s1540_s26, %s133_s8  }
   0x9   : > { %p1629_p4 = por %p141_p2, %p140_p1  ;;  %p147_p5 = scmp.eq.s32.totalorder %s1614_s28, 0 }
   0xa   : > { %p1315_p6 = scmp.lt.s32.totalorder %s1544_s27, 12  ;;  %s232_s12 = sand.u32 1, %s1540_s26  }
   0xb   : > { %p1635_p7 = por %p147_p5, %p146_p3  ;;  %s1226_s13 = sshll.u32 %s232_s12, 6 }
   0xc   : > { %s1295_s14 = sshll.u32 %s1544_s27, 6  ;;  %s236_s18 = scalar_lea.vmem [#allocation2], %s1226_s13 }
   0xd   : > { %s241_s17 = scalar_lea.hbm %s2005_s5, %s1295_s14  ;;  %s244_s19 = sshll.u32 %s236_s18, 4  ;;  %s245_s19 = int_to_ptr.vmem [resolvable:$true] %s244_s19 }
   0xe   : > { %s242_s20 = sshll.u32 %s241_s17, 4  ;;  %p1646_p8 = pnand %p1315_p6, %p1629_p4  ;;  %s243_s20 = int_to_ptr.hbm [resolvable:$true] %s242_s20 }
   0xf   : > { %p1229_p9 = scmp.ge.s32.totalorder %s1544_s27, 1  ;;  %s233_s22 = scalar_lea.sflag [#allocation3], %s232_s12 }
  0x10   : > { %s1448_s23 = sshra.s32 %s243_s20, 4  ;;  %p1452_p11 = pneg %p1646_p8  ;;  %s1449_s23 = int_to_ptr.hbm [resolvable:$true] %s1448_s23 }
  0x11   : > { %s1450_s24 = scalar_lea.hbm %s1449_s23, 64  ;;  %s1455_s13 = scalar_lea.hbm %s2005_s5, 768 }
  0x12   : > { %p1451_p10 = scmp.ne.s32.totalorder %s1449_s23, %s1450_s24  ;;  %p1456_p0 = scmp.lt.s32.totalorder %s1449_s23, %s2005_s5 }
  0x13   : > { %p1457_p1 = scmp.lt.s32.totalorder %s1455_s13, %s1450_s24 }
  0x14   : > { %p1453_p12 = pnand %p1452_p11, %p1451_p10 }
  0x15   : > { %p1458_p2 = por %p1457_p1, %p1456_p0 }
  0x16   : > { %p1454_p13 = pneg %p1453_p12 }
  0x18   : > { %p1459_p3 = pnand %p1458_p2, %p1454_p13 }
  0x1a   : > { %1462 = shalt.err (!%p1459_p3)
}
  0x1b   : > { %s1546_s12 = smov 256   ;;  %s1547_s15 = smov 16  }
  0x1c   : > { %1314 = dma.hbm_to_vmem [thread:$0]  (!%p1646_p8), %s243_s20, 1024, %s245_s19, %s233_s22, %s1546_s12, %s1546_s12, %s1547_s15  }
  0x1d   : > { %p259_p4 = scmp.lt.s32.totalorder %s1544_s27, 13 }
  0x1f   : > { %p260_p5 = pnand %p1229_p9, %p259_p4 }
  0x20   : > { %s265_s16 = sand.u32 (!%p260_p5), 1, %s1536_s25  }
  0x21   : > { %263 = sbr.rel (%p260_p5) target bundleno = 3032 (0xbd8), region = 48  ;;  %s1230_s17 = sshll.u32 (!%p260_p5), %s265_s16, 6 }
  0x22   : > { %s266_s18 = scalar_lea.sflag (!%p260_p5), [#allocation3], %s265_s16  ;;  %s1665_s23 = scalar_lea.vmem (!%p260_p5), [#allocation2], %s1230_s17 }
  0x26   : > { %1523 = dma.done.wait (%p1635_p7), %s266_s18, 1024  }
  0x27   : > { %1525 = vsyncadd (%p1635_p7), %s266_s18, 4294966272  ;;  %p300_p6 = scmp.lt.s32.totalorder %s1614_s28, 11  ;;  %p1232_p8 = scmp.ne.s32.totalorder %s1614_s28, 0 }
  0x29   : > { %s301_s19 = scalar_select %p300_p6, %s1614_s28, 11 }
  0x2a   : > { %308 = sbr.rel (%p1232_p8) target bundleno = 50 (0x32), region = 56 }
  0x2b   : > { %s1231_s20 = sshll.u32 %s301_s19, 3 }
  0x2c   : > { %s1676_s22 = scalar_lea.vmem %s2006_s6, %s1231_s20 }
  0x2f   : > { %v309_v0 = vld [vmem:[%s2000_s0] sm:$0xff]  ;;  %vm311_vm0 = vcmask 261120   ;;  %v310_v1 = vld [vmem:[%s2000_s0 + $0x8] sm:$0xff] }
  0x30   : > { %312 = vst.msk [vmem:[#allocation5] sm:$0xff] %vm311_vm0, %v309_v0 }
  0x31   : > { %313 = vst.msk [vmem:[#allocation5 + $0x8] sm:$0xff] %vm311_vm0, %v310_v1 }
  0x32 PF: > { %vm324_vm1 = vcmask 261120   ;;  %v1548_v6 = vmov 32.0   ;;  %v1239_v23 = vld [vmem:[%s1665_s23 + $0x20] sm:$0xf]  ;;  %v1297_v24 = vld [vmem:[%s1665_s23 + $0x2c] sm:$0xf0] }
  0x33   : > { %1366 = vrcp.f32 %v1548_v6  ;;  %v1703_v25 = vor.u32 %v1297_v24, %v1239_v23  ;;  %v1235_v26 = vld [vmem:[%s1665_s23] sm:$0xf]  ;;  %v1296_v27 = vld [vmem:[%s1665_s23 + $0xc] sm:$0xf0]  ;;  %v1733_v59 = vld [vmem:[%s2002_s2 + $0x8] sm:$0xff]  ;;  %s1549_s13 = smov 96  }
  0x34   : > { %v1708_v28 = vor.u32 %v1296_v27, %v1235_v26  ;;  %v1359_v53 = vld [vmem:[%s1676_s22] ss:$0 sm:$0xff]  ;;  %v1723_v56 = vld [vmem:[%s2002_s2 + $0x10] sm:$0xff]  ;;  %v1738_v60 = vld [vmem:[%s2002_s2 + $0x18] sm:$0xff]  ;;  %vm480_vm9 = vcmask 130048   ;;  %s1550_s14 = smov 64  }
  0x35   : > { %404 = vmatpush.bf16.msra.mxu0 %v1703_v25  ;;  %v1718_v55 = vld [vmem:[%s2002_s2] sm:$0xff]  ;;  %v1743_v61 = vld [vmem:[%s2002_s2 + $0x28] sm:$0xff]  ;;  %v1748_v63 = vld [vmem:[%s2002_s2 + $0x30] sm:$0xff]  ;;  %s1551_s12 = smov 32   ;;  %s1157_s20 = sshll.u32 %s2007_s7, 4  ;;  %s1158_s20 = int_to_ptr.hbm [resolvable:$true] %s1157_s20 }
  0x36   : > { %v1728_v57 = vld [vmem:[%s2002_s2 + $0x20] sm:$0xff]  ;;  %v1753_v0 = vld [vmem:[%s2002_s2 + $0x38] sm:$0xff]  ;;  %v413_v23 = vld [vmem:[%s2003_s3 + $0x8] sm:$0xff]  ;;  %p1316_p7 = scmp.eq.s32.totalorder %s1614_s28, 11  ;;  %s1554_s27 = smov 8  }
  0x37   : > { %v1685_v2 = vld [vmem:[#allocation5] sm:$0xff] }
  0x38   : > { %v325_v3 = vsel %vm324_vm1, %v1685_v2, 0.0  ;;  %v1689_v4 = vld [vmem:[#allocation5 + $0x8] sm:$0xff] }
  0x39   : > { %326 = vadd.xlane.f32.xlu0 %v325_v3  ;;  %v328_v5 = vsel %vm324_vm1, %v1689_v4, 0.0  ;;  %v1367_v7 = vpop.eup %1366  ;;  %405 = vmatpush.bf16.msra.mxu0 %v1708_v28 }
  0x3a   : > { %v332_v8 = vmul.f32 32.0, %v1367_v7  ;;  %vm336_vm2 = vweird.f32 %v1367_v7 }
  0x3c   : > { %v333_v9 = vsub.f32 1.0, %v332_v8 }
  0x3e   : > { %v334_v10 = vmul.f32 %v1367_v7, %v333_v9 }
  0x40   : > { %v335_v11 = vadd.f32 %v1367_v7, %v334_v10 }
  0x41   : > { %329 = vadd.xlane.f32.xlu0 %v328_v5 }
  0x42   : > { %v1693_v12 = vsel %vm336_vm2, %v1367_v7, %v335_v11 }
  0xac   : > { %v327_v13 = vpop.xlane.xlu0 %326 }
  0xad   : > { %v338_v14 = vmul.f32 %v1693_v12, %v327_v13 }
  0xaf   : > { %v340_v15 = vsub.f32 %v1685_v2, %v338_v14 }
  0xb1   : > { %v342_v16 = vmul.f32 %v340_v15, %v340_v15 }
  0xb3   : > { %v344_v17 = vsel %vm324_vm1, %v342_v16, 0.0 }
  0xb4   : > { %345 = vadd.xlane.f32.xlu1 %v344_v17  ;;  %v330_v18 = vpop.xlane.xlu0 %329 }
  0xb5   : > { %v339_v19 = vmul.f32 %v1693_v12, %v330_v18 }
  0xb7   : > { %v341_v20 = vsub.f32 %v1689_v4, %v339_v19  ;;  %v412_v19 = vld [vmem:[%s2003_s3] sm:$0xff] }
  0xb9   : > { %v343_v21 = vmul.f32 %v341_v20, %v341_v20 }
  0xbb   : > { %v347_v22 = vsel %vm324_vm1, %v343_v21, 0.0 }
  0xbc   : > { %348 = vadd.xlane.f32.xlu1 %v347_v22 }
 0x127   : > { %v346_v29 = vpop.xlane.xlu1 %345 }
 0x128   : > { %v350_v30 = vmul.f32 %v346_v29, %v1693_v12  ;;  %v414_v29 = vld [vmem:[%s2003_s3 + $0x10] sm:$0xff] }
 0x12a   : > { %v352_v31 = vadd.f32 1e-05, %v350_v30 }
 0x12c   : > { %1368 = vrsqrt.f32 %v352_v31  ;;  %vm360_vm4 = vweird.f32 %v352_v31 }
 0x12f   : > { %v349_v32 = vpop.xlane.xlu1 %348 }
 0x130   : > { %v351_v33 = vmul.f32 %v349_v32, %v1693_v12 }
 0x132   : > { %v1369_v34 = vpop.eup %1368  ;;  %v353_v35 = vadd.f32 1e-05, %v351_v33  ;;  %v415_v33 = vld [vmem:[%s2003_s3 + $0x18] sm:$0xff] }
 0x133   : > { %v355_v36 = vmul.f32 %v1369_v34, %v352_v31  ;;  %vm361_vm3 = vweird.f32 %v1369_v34 }
 0x134   : > { %1370 = vrsqrt.f32 %v353_v35  ;;  %vm362_vm6 = vmor %vm360_vm4, %vm361_vm3  ;;  %vm370_vm7 = vweird.f32 %v353_v35 }
 0x135   : > { %v356_v37 = vmul.f32 %v1369_v34, %v355_v36 }
 0x137   : > { %v357_v38 = vmul.f32 0.5, %v356_v37  ;;  %v416_v37 = vld [vmem:[%s2003_s3 + $0x20] sm:$0xff] }
 0x139   : > { %v358_v40 = vsub.f32 1.5, %v357_v38 }
 0x13a   : > { %v1371_v39 = vpop.eup %1370 }
 0x13b   : > { %v365_v41 = vmul.f32 %v1371_v39, %v353_v35  ;;  %v359_v43 = vmul.f32 %v1369_v34, %v358_v40  ;;  %vm371_vm5 = vweird.f32 %v1371_v39 }
 0x13c   : > { %vm372_vm8 = vmor %vm370_vm7, %vm371_vm5 }
 0x13d   : > { %v366_v42 = vmul.f32 %v1371_v39, %v365_v41  ;;  %v363_v47 = vsel %vm362_vm6, %v1369_v34, %v359_v43  ;;  %v417_v41 = vld [vmem:[%s2003_s3 + $0x28] sm:$0xff] }
 0x13e   : > { %v374_v49 = vmul.f32 %v363_v47, %v340_v15 }
 0x13f   : > { %v367_v44 = vmul.f32 0.5, %v366_v42 }
 0x141   : > { %v368_v45 = vsub.f32 1.5, %v367_v44 }
 0x143   : > { %v369_v46 = vmul.f32 %v1371_v39, %v368_v45  ;;  %v418_v45 = vld [vmem:[%s2003_s3 + $0x30] sm:$0xff] }
 0x145   : > { %v373_v48 = vsel %vm372_vm8, %v1371_v39, %v369_v46 }
 0x146   : > { %v375_v50 = vmul.f32 %v373_v48, %v341_v20 }
 0x148   : > { %v376_v51 = vpack.c.bf16 %v375_v50, %v374_v49  ;;  %v419_v49 = vld [vmem:[%s2003_s3 + $0x38] sm:$0xff] }
 0x14a   : > { %1241 = vmatmul.msk.bf16.vlgmr.msra.gmra.mxu0 %vm324_vm1, %v376_v51 }
 0x1c7   : > { %v407_v52 = vpop.f32.mrf.mxu0 }
 0x1c8   : > { %v408_v54 = vadd.f32 %v1359_v53, %v407_v52 }
 0x1ca   : > { %v420_v1 = vmul.f32 %v408_v54, %v1718_v55  ;;  %v422_v3 = vmul.f32 %v408_v54, %v1723_v56  ;;  %v424_v5 = vmul.f32 %v408_v54, %v1728_v57  ;;  %v426_v10 = vmul.f32 %v408_v54, %v1748_v63 }
 0x1cf   : > { %v409_v58 = vpop.f32.mrf.mxu0 }
 0x1d0   : > { %v410_v62 = vadd.f32 %v1359_v53, %v409_v58 }
 0x1d2   : > { %v1758_v6 = vpack.c.bf16 %v410_v62, %v408_v54  ;;  %v421_v7 = vmul.f32 %v410_v62, %v1733_v59  ;;  %v423_v8 = vmul.f32 %v410_v62, %v1738_v60  ;;  %v425_v9 = vmul.f32 %v410_v62, %v1743_v61 }
 0x1d3   : > { %v427_v11 = vmul.f32 %v410_v62, %v1753_v0 }
 0x1d4   : > { %434 = vrot.lane.b32.xlu2 %v1758_v6, %s1549_s13  ;;  %v428_v13 = vpack.c.bf16 %v421_v7, %v420_v1  ;;  %v429_v14 = vpack.c.bf16 %v423_v8, %v422_v3  ;;  %v430_v15 = vpack.c.bf16 %v425_v9, %v424_v5 }
 0x1d5   : > { %v431_v16 = vpack.c.bf16 %v427_v11, %v426_v10 }
 0x22e   : > { %v435_v17 = vpop.permute.xlu2 %434 }
 0x22f   : > { %v449_v18 = vsel %vm324_vm1, %v435_v17, 0 }
 0x230   : > { %458 = vmatpush.bf16.xpose.msra.mxu1 %v449_v18 }
 0x237   : > { %1242 = vmatmul.msk.bf16.vlgmr.msra.gmra.mxu1 %vm324_vm1, %v428_v13 }
 0x247   : > { %1243 = vmatmul.msk.bf16.gmra.mxu1 %vm324_vm1, %v429_v14 }
 0x257   : > { %1244 = vmatmul.msk.bf16.gmra.mxu1 %vm324_vm1, %v430_v15 }
 0x267   : > { %1245 = vmatmul.msk.bf16.gmra.mxu1 %vm324_vm1, %v431_v16 }
 0x2b4   : > { %v460_v20 = vpop.f32.mrf.mxu1 }
 0x2b5   : > { %v461_v21 = vadd.f32 %v460_v20, %v412_v19 }
 0x2b7   : > { %v481_v22 = vsel %vm480_vm9, %v461_v21, -inf }
 0x2b8   : > { %482 = vmax.xlane.f32.xlu2 %v481_v22 }
 0x2bc   : > { %v462_v24 = vpop.f32.mrf.mxu1 }
 0x2bd   : > { %v463_v26 = vadd.f32 %v462_v24, %v413_v23 }
 0x2bf   : > { %v484_v27 = vsel %vm480_vm9, %v463_v26, -inf }
 0x2c0   : > { %485 = vmax.xlane.f32.xlu0 %v484_v27 }
 0x2c4   : > { %v465_v30 = vpop.f32.mrf.mxu1 }
 0x2c5   : > { %v466_v31 = vadd.f32 %v465_v30, %v414_v29 }
 0x2c7   : > { %v487_v32 = vsel %vm480_vm9, %v466_v31, -inf }
 0x2c8   : > { %488 = vmax.xlane.f32.xlu1 %v487_v32 }
 0x2cc   : > { %v467_v34 = vpop.f32.mrf.mxu1 }
 0x2cd   : > { %v468_v35 = vadd.f32 %v467_v34, %v415_v33 }
 0x2cf   : > { %v490_v36 = vsel %vm480_vm9, %v468_v35, -inf }
 0x2d0   : > { %491 = vmax.xlane.f32.xlu0 %v490_v36 }
 0x2d4   : > { %v470_v38 = vpop.f32.mrf.mxu1 }
 0x2d5   : > { %v471_v39 = vadd.f32 %v470_v38, %v416_v37 }
 0x2d7   : > { %v493_v40 = vsel %vm480_vm9, %v471_v39, -inf }
 0x2d8   : > { %494 = vmax.xlane.f32.xlu1 %v493_v40 }
 0x2dc   : > { %v472_v42 = vpop.f32.mrf.mxu1 }
 0x2dd   : > { %v473_v43 = vadd.f32 %v472_v42, %v417_v41 }
 0x2df   : > { %v496_v44 = vsel %vm480_vm9, %v473_v43, -inf }
 0x2e0   : > { %497 = vmax.xlane.f32.xlu0 %v496_v44 }
 0x2e4   : > { %v475_v46 = vpop.f32.mrf.mxu1 }
 0x2e5   : > { %v476_v47 = vadd.f32 %v475_v46, %v418_v45 }
 0x2e7   : > { %v499_v48 = vsel %vm480_vm9, %v476_v47, -inf }
 0x2e8   : > { %500 = vmax.xlane.f32.xlu1 %v499_v48 }
 0x2ec   : > { %v477_v50 = vpop.f32.mrf.mxu1 }
 0x2ed   : > { %v478_v51 = vadd.f32 %v477_v50, %v419_v49 }
 0x2ef   : > { %v502_v52 = vsel %vm480_vm9, %v478_v51, -inf }
 0x2f0   : > { %503 = vmax.xlane.f32.xlu0 %v502_v52 }
 0x32b   : > { %v483_v53 = vpop.xlane.xlu2 %482 }
 0x32c   : > { %v505_v54 = vsub.f32 %v461_v21, %v483_v53 }
 0x32e   : > { %v513_v58 = vmul.f32 1.442695, %v505_v54 }
 0x330   : > { %1372 = vpow2.f32 %v513_v58 }
 0x333   : > { %v486_v62 = vpop.xlane.xlu0 %485 }
 0x334   : > { %v506_v1 = vsub.f32 %v463_v26, %v486_v62 }
 0x336   : > { %v1804_v3 = vpop.eup %1372  ;;  %v515_v5 = vmul.f32 1.442695, %v506_v1 }
 0x337   : > { %v529_v7 = vsel %vm480_vm9, %v1804_v3, 0.0 }
 0x338   : > { %1374 = vpow2.f32 %v515_v5  ;;  %530 = vadd.xlane.f32.xlu1 %v529_v7 }
 0x33b   : > { %v489_v8 = vpop.xlane.xlu1 %488 }
 0x33c   : > { %v507_v9 = vsub.f32 %v466_v31, %v489_v8 }
 0x33e   : > { %v1375_v10 = vpop.eup %1374  ;;  %v517_v11 = vmul.f32 1.442695, %v507_v9 }
 0x33f   : > { %v532_v13 = vsel %vm480_vm9, %v1375_v10, 0.0 }
 0x340   : > { %1376 = vpow2.f32 %v517_v11  ;;  %533 = vadd.xlane.f32.xlu0 %v532_v13 }
 0x343   : > { %v492_v14 = vpop.xlane.xlu0 %491 }
 0x344   : > { %v508_v15 = vsub.f32 %v468_v35, %v492_v14 }
 0x346   : > { %v1377_v16 = vpop.eup %1376  ;;  %v519_v17 = vmul.f32 1.442695, %v508_v15 }
 0x347   : > { %v535_v18 = vsel %vm480_vm9, %v1377_v16, 0.0 }
 0x348   : > { %1378 = vpow2.f32 %v519_v17  ;;  %536 = vadd.xlane.f32.xlu2 %v535_v18 }
 0x34b   : > { %v495_v19 = vpop.xlane.xlu1 %494 }
 0x34c   : > { %v509_v20 = vsub.f32 %v471_v39, %v495_v19 }
 0x34e   : > { %v1379_v21 = vpop.eup %1378  ;;  %v521_v22 = vmul.f32 1.442695, %v509_v20 }
 0x34f   : > { %v538_v23 = vsel %vm480_vm9, %v1379_v21, 0.0 }
 0x350   : > { %1380 = vpow2.f32 %v521_v22  ;;  %539 = vadd.xlane.f32.xlu0 %v538_v23 }
 0x351   : > { %573 = vrot.lane.b32.xlu1 %v1758_v6, %s1550_s14 }
 0x353   : > { %v498_v24 = vpop.xlane.xlu0 %497 }
 0x354   : > { %v510_v26 = vsub.f32 %v473_v43, %v498_v24 }
 0x356   : > { %v1381_v27 = vpop.eup %1380  ;;  %v523_v29 = vmul.f32 1.442695, %v510_v26 }
 0x357   : > { %v541_v30 = vsel %vm480_vm9, %v1381_v27, 0.0 }
 0x358   : > { %1382 = vpow2.f32 %v523_v29  ;;  %542 = vadd.xlane.f32.xlu2 %v541_v30 }
 0x359   : > { %636 = vrot.lane.b32.xlu1 %v1703_v25, %s1551_s12 }
 0x35b   : > { %v501_v31 = vpop.xlane.xlu1 %500 }
 0x35c   : > { %v511_v32 = vsub.f32 %v476_v47, %v501_v31 }
 0x35e   : > { %v1383_v33 = vpop.eup %1382  ;;  %v525_v34 = vmul.f32 1.442695, %v511_v32 }
 0x35f   : > { %v544_v35 = vsel %vm480_vm9, %v1383_v33, 0.0 }
 0x360   : > { %1384 = vpow2.f32 %v525_v34  ;;  %545 = vadd.xlane.f32.xlu0 %v544_v35 }
 0x363   : > { %v504_v36 = vpop.xlane.xlu0 %503 }
 0x364   : > { %v512_v37 = vsub.f32 %v478_v51, %v504_v36 }
 0x366   : > { %v1385_v38 = vpop.eup %1384  ;;  %v527_v6 = vmul.f32 1.442695, %v512_v37 }
 0x367   : > { %v547_v39 = vsel %vm480_vm9, %v1385_v38, 0.0 }
 0x368   : > { %1386 = vpow2.f32 %v527_v6  ;;  %548 = vadd.xlane.f32.xlu2 %v547_v39 }
 0x36e   : > { %v1387_v40 = vpop.eup %1386 }
 0x36f   : > { %v550_v41 = vsel %vm480_vm9, %v1387_v40, 0.0 }
 0x370   : > { %551 = vadd.xlane.f32.xlu0 %v550_v41 }
 0x380   : > { %634 = vrot.lane.b32.xlu2 %v1708_v28, %s1551_s12 }
 0x3ab   : > { %v531_v43 = vpop.xlane.xlu1 %530 }
 0x3b3   : > { %v534_v42 = vpop.xlane.xlu0 %533 }
 0x3b4   : > { %1388 = vrcp.f32 %v534_v42 }
 0x3b5   : > { %1390 = vrcp.f32 %v531_v43  ;;  %v1360_v43 = vld [vmem:[%s1676_s22 + $0x3] ss:$0 sm:$0xff] }
 0x3ba   : > { %v1389_v44 = vpop.eup %1388 }
 0x3bb   : > { %v1391_v45 = vpop.eup %1390  ;;  %v562_v46 = vmul.f32 %v1389_v44, %v1375_v10  ;;  %v537_v51 = vpop.xlane.xlu2 %536 }
 0x3bc   : > { %v561_v48 = vmul.f32 %v1391_v45, %v1804_v3 }
 0x3be   : > { %v569_v50 = vpack.c.bf16 %v562_v46, %v561_v48 }
 0x3c3   : > { %v574_v47 = vpop.permute.xlu1 %573  ;;  %v540_v49 = vpop.xlane.xlu0 %539 }
 0x3c4   : > { %595 = vmatpush.bf16.msra.mxu2 %v574_v47  ;;  %1392 = vrcp.f32 %v540_v49 }
 0x3c5   : > { %1394 = vrcp.f32 %v537_v51 }
 0x3c7   : > { %1246 = vmatmul.msk.bf16.vlgmr.msra.gmra.mxu2 %vm480_vm9, %v569_v50 }
 0x3ca   : > { %v1393_v25 = vpop.eup %1392 }
 0x3cb   : > { %v1395_v28 = vpop.eup %1394  ;;  %v564_v52 = vmul.f32 %v1393_v25, %v1379_v21  ;;  %v543_v62 = vpop.xlane.xlu2 %542 }
 0x3cc   : > { %v563_v53 = vmul.f32 %v1395_v28, %v1377_v16  ;;  %v637_v20 = vpop.permute.xlu1 %636 }
 0x3cd   : > { %649 = vmatpush.bf16.msra.mxu3 %v637_v20 }
 0x3ce   : > { %v570_v58 = vpack.c.bf16 %v564_v52, %v563_v53  ;;  %v1257_v52 = vld [vmem:[%s1665_s23 + $0x24] sm:$0xf]  ;;  %v1299_v53 = vld [vmem:[%s1665_s23 + $0x30] sm:$0xf0] }
 0x3d3   : > { %v546_v54 = vpop.xlane.xlu0 %545 }
 0x3d4   : > { %1396 = vrcp.f32 %v546_v54 }
 0x3d5   : > { %1398 = vrcp.f32 %v543_v62  ;;  %v1253_v62 = vld [vmem:[%s1665_s23 + $0x4] sm:$0xf] }
 0x3d7   : > { %1247 = vmatmul.msk.bf16.gmra.mxu2 %vm480_vm9, %v570_v58  ;;  %v1849_v58 = vor.u32 %v1299_v53, %v1257_v52 }
 0x3d9   : > { %750 = vrot.lane.b32.xlu2 %v1849_v58, %s1549_s13  ;;  %731 = vmatpush.bf16.msrb.mxu0 %v1849_v58 }
 0x3da   : > { %v1397_v1 = vpop.eup %1396 }
 0x3db   : > { %v1399_v3 = vpop.eup %1398  ;;  %v566_v5 = vmul.f32 %v1397_v1, %v1383_v33  ;;  %v549_v10 = vpop.xlane.xlu2 %548  ;;  %v1298_v1 = vld [vmem:[%s1665_s23 + $0x10] sm:$0xf0] }
 0x3dc   : > { %v565_v7 = vmul.f32 %v1399_v3, %v1381_v27 }
 0x3de   : > { %v571_v9 = vpack.c.bf16 %v566_v5, %v565_v7  ;;  %v1858_v7 = vor.u32 %v1298_v1, %v1253_v62 }
 0x3e0   : > { %732 = vmatpush.bf16.msrb.mxu0 %v1858_v7 }
 0x3e3   : > { %v552_v8 = vpop.xlane.xlu0 %551  ;;  %v635_v22 = vpop.permute.xlu2 %634 }
 0x3e4   : > { %1400 = vrcp.f32 %v552_v8  ;;  %650 = vmatpush.bf16.msra.mxu3 %v635_v22 }
 0x3e5   : > { %1402 = vrcp.f32 %v549_v10 }
 0x3e7   : > { %1248 = vmatmul.msk.bf16.gmra.mxu2 %vm480_vm9, %v571_v9 }
 0x3ea   : > { %v1401_v11 = vpop.eup %1400 }
 0x3eb   : > { %v1403_v13 = vpop.eup %1402  ;;  %v568_v14 = vmul.f32 %v1401_v11, %v1387_v40 }
 0x3ec   : > { %v567_v15 = vmul.f32 %v1403_v13, %v1385_v38 }
 0x3ee   : > { %v572_v16 = vpack.c.bf16 %v568_v14, %v567_v15 }
 0x3f7   : > { %1249 = vmatmul.msk.bf16.gmra.mxu2 %vm480_vm9, %v572_v16 }
 0x433   : > { %v751_v11 = vpop.permute.xlu2 %750 }
 0x434   : > { %763 = vmatpush.bf16.msrb.mxu3 %v751_v11 }
 0x44a   : > { %v597_v17 = vpop.f32.mrf.mxu2 }
 0x44b   : > { %v617_v30 = vmul.f32 %v597_v17, %v1718_v55 }
 0x452   : > { %v599_v18 = vpop.f32.mrf.mxu2 }
 0x453   : > { %v618_v31 = vmul.f32 %v599_v18, %v1733_v59 }
 0x45a   : > { %v602_v19 = vpop.f32.mrf.mxu2 }
 0x45b   : > { %v619_v27 = vmul.f32 %v602_v19, %v1723_v56 }
 0x45d   : > { %v625_v34 = vadd.f32 %v619_v27, %v617_v30 }
 0x462   : > { %v604_v21 = vpop.f32.mrf.mxu2 }
 0x463   : > { %v620_v29 = vmul.f32 %v604_v21, %v1738_v60 }
 0x465   : > { %v626_v35 = vadd.f32 %v620_v29, %v618_v31 }
 0x46a   : > { %v607_v23 = vpop.f32.mrf.mxu2 }
 0x46b   : > { %v621_v32 = vmul.f32 %v607_v23, %v1728_v57 }
 0x46d   : > { %v627_v38 = vadd.f32 %v625_v34, %v621_v32 }
 0x472   : > { %v609_v24 = vpop.f32.mrf.mxu2 }
 0x473   : > { %v622_v33 = vmul.f32 %v609_v24, %v1743_v61 }
 0x475   : > { %v628_v6 = vadd.f32 %v626_v35, %v622_v33  ;;  %v1300_v33 = vld [vmem:[%s2001_s1] sm:$0xff] }
 0x47a   : > { %v612_v26 = vpop.f32.mrf.mxu2 }
 0x47b   : > { %v623_v36 = vmul.f32 %v612_v26, %v1748_v63 }
 0x47d   : > { %v629_v40 = vadd.f32 %v627_v38, %v623_v36 }
 0x482   : > { %v614_v37 = vpop.f32.mrf.mxu2 }
 0x483   : > { %v624_v39 = vmul.f32 %v614_v37, %v1753_v0 }
 0x485   : > { %v630_v41 = vadd.f32 %v628_v6, %v624_v39 }
 0x487   : > { %v631_v42 = vpack.c.bf16 %v630_v41, %v629_v40  ;;  %v1362_v41 = vld [vmem:[%s1676_s22 + $0x1] ss:$0 sm:$0xff] }
 0x489   : > { %1250 = vmatmul.msk.bf16.vlgmr.msra.gmra.mxu3 %vm324_vm1, %v631_v42 }
 0x50c   : > { %v652_v44 = vpop.f32.mrf.mxu3 }
 0x50d   : > { %v653_v45 = vadd.f32 %v1360_v43, %v652_v44  ;;  %v1361_v44 = vld [vmem:[%s1676_s22 + $0x4] ss:$0 sm:$0xff] }
 0x50f   : > { %v1836_v46 = vadd.f32 %v653_v45, %v1685_v2 }
 0x511   : > { %v659_v47 = vsel %vm324_vm1, %v1836_v46, 0.0 }
 0x512   : > { %660 = vadd.xlane.f32.xlu0 %v659_v47 }
 0x514   : > { %v654_v48 = vpop.f32.mrf.mxu3 }
 0x515   : > { %v655_v49 = vadd.f32 %v1360_v43, %v654_v48 }
 0x517   : > { %v1841_v50 = vadd.f32 %v655_v49, %v1689_v4 }
 0x519   : > { %v662_v51 = vsel %vm324_vm1, %v1841_v50, 0.0 }
 0x51a   : > { %663 = vadd.xlane.f32.xlu1 %v662_v51 }
 0x585   : > { %v661_v25 = vpop.xlane.xlu0 %660 }
 0x586   : > { %v665_v28 = vmul.f32 %v661_v25, %v1693_v12 }
 0x588   : > { %v667_v2 = vsub.f32 %v1836_v46, %v665_v28 }
 0x58a   : > { %v669_v54 = vmul.f32 %v667_v2, %v667_v2 }
 0x58c   : > { %v671_v3 = vsel %vm324_vm1, %v669_v54, 0.0 }
 0x58d   : > { %v664_v4 = vpop.xlane.xlu1 %663  ;;  %672 = vadd.xlane.f32.xlu0 %v671_v3 }
 0x58e   : > { %v666_v5 = vmul.f32 %v664_v4, %v1693_v12 }
 0x590   : > { %v668_v8 = vsub.f32 %v1841_v50, %v666_v5 }
 0x592   : > { %v670_v9 = vmul.f32 %v668_v8, %v668_v8 }
 0x594   : > { %v674_v10 = vsel %vm324_vm1, %v670_v9, 0.0 }
 0x595   : > { %675 = vadd.xlane.f32.xlu0 %v674_v10  ;;  %v771_v10 = vld [vmem:[%s2004_s4] sm:$0xff] }
 0x5a9   : > { %748 = vrot.lane.b32.xlu0 %v1858_v7, %s1549_s13 }
 0x600   : > { %v673_v13 = vpop.xlane.xlu0 %672 }
 0x601   : > { %v677_v14 = vmul.f32 %v673_v13, %v1693_v12 }
 0x603   : > { %v679_v15 = vadd.f32 1e-05, %v677_v14 }
 0x605   : > { %1404 = vrsqrt.f32 %v679_v15  ;;  %vm687_vm11 = vweird.f32 %v679_v15 }
 0x608   : > { %v676_v16 = vpop.xlane.xlu0 %675 }
 0x609   : > { %v678_v17 = vmul.f32 %v676_v16, %v1693_v12 }
 0x60b   : > { %v1405_v18 = vpop.eup %1404  ;;  %v680_v19 = vadd.f32 1e-05, %v678_v17 }
 0x60c   : > { %v682_v20 = vmul.f32 %v1405_v18, %v679_v15  ;;  %vm688_vm10 = vweird.f32 %v1405_v18  ;;  %v772_v15 = vld [vmem:[%s2004_s4 + $0x8] sm:$0xff] }
 0x60d   : > { %1406 = vrsqrt.f32 %v680_v19  ;;  %vm689_vm13 = vmor %vm687_vm11, %vm688_vm10  ;;  %vm697_vm14 = vweird.f32 %v680_v19 }
 0x60e   : > { %v683_v21 = vmul.f32 %v1405_v18, %v682_v20 }
 0x610   : > { %v684_v22 = vmul.f32 0.5, %v683_v21 }
 0x612   : > { %v685_v24 = vsub.f32 1.5, %v684_v22 }
 0x613   : > { %v1407_v23 = vpop.eup %1406 }
 0x614   : > { %v692_v26 = vmul.f32 %v1407_v23, %v680_v19  ;;  %v686_v29 = vmul.f32 %v1405_v18, %v685_v24  ;;  %vm698_vm12 = vweird.f32 %v1407_v23  ;;  %v773_v19 = vld [vmem:[%s2004_s4 + $0x10] sm:$0xff] }
 0x615   : > { %vm699_vm15 = vmor %vm697_vm14, %vm698_vm12 }
 0x616   : > { %v693_v27 = vmul.f32 %v1407_v23, %v692_v26  ;;  %v690_v34 = vsel %vm689_vm13, %v1405_v18, %v686_v29  ;;  %v775_v29 = vld [vmem:[%s2004_s4 + $0x20] sm:$0xff] }
 0x617   : > { %v701_v37 = vmul.f32 %v690_v34, %v667_v2 }
 0x618   : > { %v694_v30 = vmul.f32 0.5, %v693_v27 }
 0x61a   : > { %v695_v31 = vsub.f32 1.5, %v694_v30 }
 0x61b   : > { %v749_v32 = vpop.permute.xlu0 %748 }
 0x61c   : > { %v696_v35 = vmul.f32 %v1407_v23, %v695_v31  ;;  %764 = vmatpush.bf16.msrb.mxu3 %v749_v32 }
 0x61e   : > { %v700_v36 = vsel %vm699_vm15, %v1407_v23, %v696_v35  ;;  %v774_v23 = vld [vmem:[%s2004_s4 + $0x18] sm:$0xff] }
 0x61f   : > { %1264 = vmatmul.msk.bf16.vlgmr.msrb.gmra.mxu3 %vm324_vm1, %v1300_v33  ;;  %v702_v38 = vmul.f32 %v700_v36, %v668_v8  ;;  %v776_v33 = vld [vmem:[%s2004_s4 + $0x28] sm:$0xff] }
 0x621   : > { %v703_v6 = vpack.c.bf16 %v702_v38, %v701_v37  ;;  %v777_v37 = vld [vmem:[%s2004_s4 + $0x30] sm:$0xff] }
 0x623   : > { %1259 = vmatmul.msk.bf16.vlgmr.msrb.gmra.mxu0 %vm324_vm1, %v703_v6 }
 0x6a0   : > { %v734_v39 = vpop.f32.mrf.mxu0 }
 0x6a1   : > { %v735_v51 = vadd.f32 %v1361_v44, %v734_v39 }
 0x6a2   : > { %v766_v40 = vpop.f32.mrf.mxu3 }
 0x6a3   : > { %v767_v45 = vadd.f32 %v1362_v41, %v766_v40  ;;  %v779_v2 = vmul.f32 %v735_v51, %v1718_v55  ;;  %v781_v54 = vmul.f32 %v735_v51, %v1723_v56  ;;  %v783_v3 = vmul.f32 %v735_v51, %v1728_v57  ;;  %v778_v40 = vld [vmem:[%s2004_s4 + $0x38] sm:$0xff] }
 0x6a4   : > { %v785_v8 = vmul.f32 %v735_v51, %v1748_v63 }
 0x6a8   : > { %v736_v42 = vpop.f32.mrf.mxu0 }
 0x6a9   : > { %v737_v48 = vadd.f32 %v1361_v44, %v736_v42 }
 0x6aa   : > { %v768_v43 = vpop.f32.mrf.mxu3 }
 0x6ab   : > { %v769_v47 = vadd.f32 %v1362_v41, %v768_v43  ;;  %v780_v28 = vmul.f32 %v737_v48, %v1733_v59  ;;  %v782_v53 = vmul.f32 %v737_v48, %v1738_v60  ;;  %v784_v1 = vmul.f32 %v737_v48, %v1743_v61 }
 0x6ac   : > { %v786_v5 = vmul.f32 %v737_v48, %v1753_v0 }
 0x6ad   : > { %v1874_v49 = vpack.c.bf16 %v769_v47, %v767_v45  ;;  %v787_v52 = vpack.c.bf16 %v780_v28, %v779_v2  ;;  %v788_v62 = vpack.c.bf16 %v782_v53, %v781_v54  ;;  %v789_v4 = vpack.c.bf16 %v784_v1, %v783_v3 }
 0x6ae   : > { %v790_v9 = vpack.c.bf16 %v786_v5, %v785_v8 }
 0x6af   : > { %v805_v25 = vsel %vm324_vm1, %v1874_v49, 0 }
 0x6b0   : > { %814 = vmatpush.bf16.xpose.msra.mxu0 %v805_v25 }
 0x6b7   : > { %1265 = vmatmul.msk.bf16.vlgmr.msra.gmra.mxu0 %vm324_vm1, %v787_v52 }
 0x6c7   : > { %1266 = vmatmul.msk.bf16.gmra.mxu0 %vm324_vm1, %v788_v62 }
 0x6d7   : > { %1267 = vmatmul.msk.bf16.gmra.mxu0 %vm324_vm1, %v789_v4 }
 0x6e7   : > { %1268 = vmatmul.msk.bf16.gmra.mxu0 %vm324_vm1, %v790_v9 }
 0x734   : > { %v816_v11 = vpop.f32.mrf.mxu0 }
 0x735   : > { %v817_v13 = vadd.f32 %v816_v11, %v771_v10 }
 0x737   : > { %v836_v14 = vsel %vm480_vm9, %v817_v13, -inf }
 0x738   : > { %837 = vmax.xlane.f32.xlu2 %v836_v14 }
 0x73c   : > { %v818_v16 = vpop.f32.mrf.mxu0 }
 0x73d   : > { %v819_v17 = vadd.f32 %v818_v16, %v772_v15 }
 0x73f   : > { %v839_v18 = vsel %vm480_vm9, %v819_v17, -inf }
 0x740   : > { %840 = vmax.xlane.f32.xlu1 %v839_v18 }
 0x744   : > { %v821_v20 = vpop.f32.mrf.mxu0 }
 0x745   : > { %v822_v21 = vadd.f32 %v821_v20, %v773_v19 }
 0x747   : > { %v842_v22 = vsel %vm480_vm9, %v822_v21, -inf }
 0x748   : > { %843 = vmax.xlane.f32.xlu0 %v842_v22 }
 0x74c   : > { %v823_v24 = vpop.f32.mrf.mxu0 }
 0x74d   : > { %v824_v26 = vadd.f32 %v823_v24, %v774_v23 }
 0x74f   : > { %v845_v27 = vsel %vm480_vm9, %v824_v26, -inf }
 0x750   : > { %846 = vmax.xlane.f32.xlu1 %v845_v27 }
 0x754   : > { %v826_v30 = vpop.f32.mrf.mxu0 }
 0x755   : > { %v827_v31 = vadd.f32 %v826_v30, %v775_v29 }
 0x757   : > { %v848_v32 = vsel %vm480_vm9, %v827_v31, -inf }
 0x758   : > { %849 = vmax.xlane.f32.xlu1 %v848_v32 }
 0x75c   : > { %v828_v34 = vpop.f32.mrf.mxu0 }
 0x75d   : > { %v829_v35 = vadd.f32 %v828_v34, %v776_v33 }
 0x75f   : > { %v851_v36 = vsel %vm480_vm9, %v829_v35, -inf }
 0x760   : > { %852 = vmax.xlane.f32.xlu2 %v851_v36 }
 0x764   : > { %v831_v38 = vpop.f32.mrf.mxu0 }
 0x765   : > { %v832_v6 = vadd.f32 %v831_v38, %v777_v37 }
 0x767   : > { %v854_v39 = vsel %vm480_vm9, %v832_v6, -inf }
 0x768   : > { %855 = vmax.xlane.f32.xlu1 %v854_v39 }
 0x76c   : > { %v833_v41 = vpop.f32.mrf.mxu0 }
 0x76d   : > { %v834_v42 = vadd.f32 %v833_v41, %v778_v40 }
 0x76f   : > { %v857_v43 = vsel %vm480_vm9, %v834_v42, -inf }
 0x770   : > { %858 = vmax.xlane.f32.xlu2 %v857_v43 }
 0x7ab   : > { %v838_v44 = vpop.xlane.xlu2 %837 }
 0x7ac   : > { %v860_v45 = vsub.f32 %v817_v13, %v838_v44 }
 0x7ae   : > { %v868_v47 = vmul.f32 1.442695, %v860_v45 }
 0x7b0   : > { %1408 = vpow2.f32 %v868_v47 }
 0x7b3   : > { %v841_v48 = vpop.xlane.xlu1 %840 }
 0x7b4   : > { %v861_v51 = vsub.f32 %v819_v17, %v841_v48 }
 0x7b6   : > { %v1409_v25 = vpop.eup %1408  ;;  %v870_v28 = vmul.f32 1.442695, %v861_v51 }
 0x7b7   : > { %v884_v2 = vsel %vm480_vm9, %v1409_v25, 0.0 }
 0x7b8   : > { %1410 = vpow2.f32 %v870_v28  ;;  %885 = vadd.xlane.f32.xlu1 %v884_v2 }
 0x7bb   : > { %v844_v52 = vpop.xlane.xlu0 %843 }
 0x7bc   : > { %v862_v53 = vsub.f32 %v822_v21, %v844_v52 }
 0x7be   : > { %v1411_v54 = vpop.eup %1410  ;;  %v872_v62 = vmul.f32 1.442695, %v862_v53 }
 0x7bf   : > { %v887_v1 = vsel %vm480_vm9, %v1411_v54, 0.0 }
 0x7c0   : > { %1412 = vpow2.f32 %v872_v62  ;;  %888 = vadd.xlane.f32.xlu2 %v887_v1 }
 0x7c3   : > { %v847_v3 = vpop.xlane.xlu1 %846 }
 0x7c4   : > { %v863_v4 = vsub.f32 %v824_v26, %v847_v3 }
 0x7c6   : > { %v1413_v5 = vpop.eup %1412  ;;  %v874_v8 = vmul.f32 1.442695, %v863_v4 }
 0x7c7   : > { %v890_v9 = vsel %vm480_vm9, %v1413_v5, 0.0 }
 0x7c8   : > { %1414 = vpow2.f32 %v874_v8  ;;  %891 = vadd.xlane.f32.xlu0 %v890_v9 }
 0x7cb   : > { %v850_v10 = vpop.xlane.xlu1 %849 }
 0x7cc   : > { %v864_v11 = vsub.f32 %v827_v31, %v850_v10 }
 0x7ce   : > { %v1415_v13 = vpop.eup %1414  ;;  %v876_v14 = vmul.f32 1.442695, %v864_v11 }
 0x7cf   : > { %v893_v15 = vsel %vm480_vm9, %v1415_v13, 0.0 }
 0x7d0   : > { %1416 = vpow2.f32 %v876_v14  ;;  %894 = vadd.xlane.f32.xlu2 %v893_v15 }
 0x7d1   : > { %929 = vrot.lane.b32.xlu1 %v1874_v49, %s1549_s13 }
 0x7d3   : > { %v853_v16 = vpop.xlane.xlu2 %852 }
 0x7d4   : > { %v865_v17 = vsub.f32 %v829_v35, %v853_v16 }
 0x7d6   : > { %v1417_v18 = vpop.eup %1416  ;;  %v878_v19 = vmul.f32 1.442695, %v865_v17 }
 0x7d7   : > { %v896_v20 = vsel %vm480_vm9, %v1417_v18, 0.0 }
 0x7d8   : > { %1418 = vpow2.f32 %v878_v19  ;;  %897 = vadd.xlane.f32.xlu0 %v896_v20 }
 0x7d9   : > { %992 = vrot.lane.b32.xlu1 %v1849_v58, %s1551_s12 }
 0x7db   : > { %v856_v21 = vpop.xlane.xlu1 %855 }
 0x7dc   : > { %v866_v22 = vsub.f32 %v832_v6, %v856_v21 }
 0x7de   : > { %v1419_v23 = vpop.eup %1418  ;;  %v880_v24 = vmul.f32 1.442695, %v866_v22 }
 0x7df   : > { %v899_v26 = vsel %vm480_vm9, %v1419_v23, 0.0 }
 0x7e0   : > { %1420 = vpow2.f32 %v880_v24  ;;  %900 = vadd.xlane.f32.xlu2 %v899_v26 }
 0x7e3   : > { %v859_v49 = vpop.xlane.xlu2 %858 }
 0x7e4   : > { %v867_v27 = vsub.f32 %v834_v42, %v859_v49 }
 0x7e6   : > { %v1421_v29 = vpop.eup %1420  ;;  %v882_v30 = vmul.f32 1.442695, %v867_v27 }
 0x7e7   : > { %v902_v31 = vsel %vm480_vm9, %v1421_v29, 0.0 }
 0x7e8   : > { %1422 = vpow2.f32 %v882_v30  ;;  %903 = vadd.xlane.f32.xlu0 %v902_v31 }
 0x7ee   : > { %v1423_v32 = vpop.eup %1422 }
 0x7ef   : > { %v905_v33 = vsel %vm480_vm9, %v1423_v32, 0.0 }
 0x7f0   : > { %906 = vadd.xlane.f32.xlu2 %v905_v33 }
 0x7fc   : > { %990 = vrot.lane.b32.xlu0 %v1858_v7, %s1551_s12 }
 0x82b   : > { %v886_v34 = vpop.xlane.xlu1 %885 }
 0x833   : > { %v889_v58 = vpop.xlane.xlu2 %888 }
 0x834   : > { %1424 = vrcp.f32 %v889_v58 }
 0x835   : > { %1426 = vrcp.f32 %v886_v34 }
 0x83a   : > { %v1425_v35 = vpop.eup %1424 }
 0x83b   : > { %v1427_v36 = vpop.eup %1426  ;;  %v917_v37 = vmul.f32 %v1425_v35, %v1411_v54  ;;  %v892_v41 = vpop.xlane.xlu0 %891  ;;  %v1280_v35 = vld [vmem:[%s1665_s23 + $0x28] sm:$0xf] }
 0x83c   : > { %v916_v38 = vmul.f32 %v1427_v36, %v1409_v25  ;;  %v1302_v36 = vld [vmem:[%s1665_s23 + $0x34] sm:$0xf0] }
 0x83e   : > { %v924_v39 = vpack.c.bf16 %v917_v37, %v916_v38  ;;  %v1281_v37 = vor.u32 %v1302_v36, %v1280_v35 }
 0x840   : > { %1087 = vmatpush.bf16.msrb.mxu1 %v1281_v37 }
 0x843   : > { %v930_v6 = vpop.permute.xlu1 %929  ;;  %v895_v40 = vpop.xlane.xlu2 %894 }
 0x844   : > { %951 = vmatpush.bf16.msra.mxu3 %v930_v6  ;;  %1428 = vrcp.f32 %v895_v40 }
 0x845   : > { %1430 = vrcp.f32 %v892_v41 }
 0x847   : > { %1269 = vmatmul.msk.bf16.vlgmr.msra.gmra.mxu3 %vm480_vm9, %v924_v39 }
 0x84a   : > { %v1429_v42 = vpop.eup %1428 }
 0x84b   : > { %v1431_v43 = vpop.eup %1430  ;;  %v919_v7 = vmul.f32 %v1429_v42, %v1415_v13  ;;  %v898_v48 = vpop.xlane.xlu0 %897 }
 0x84c   : > { %v918_v44 = vmul.f32 %v1431_v43, %v1413_v5  ;;  %v993_v8 = vpop.permute.xlu1 %992 }
 0x84d   : > { %1005 = vmatpush.bf16.msrb.mxu2 %v993_v8 }
 0x84e   : > { %v925_v47 = vpack.c.bf16 %v919_v7, %v918_v44  ;;  %v1276_v44 = vld [vmem:[%s1665_s23 + $0x8] sm:$0xf] }
 0x853   : > { %v901_v45 = vpop.xlane.xlu2 %900 }
 0x854   : > { %1432 = vrcp.f32 %v901_v45  ;;  %v1301_v45 = vld [vmem:[%s1665_s23 + $0x14] sm:$0xf0] }
 0x855   : > { %1434 = vrcp.f32 %v898_v48 }
 0x857   : > { %1270 = vmatmul.msk.bf16.gmra.mxu3 %vm480_vm9, %v925_v47  ;;  %v1277_v47 = vor.u32 %v1301_v45, %v1276_v44 }
 0x859   : > { %1088 = vmatpush.bf16.msrb.mxu1 %v1277_v47 }
 0x85a   : > { %v1433_v51 = vpop.eup %1432 }
 0x85b   : > { %v1435_v25 = vpop.eup %1434  ;;  %v921_v28 = vmul.f32 %v1433_v51, %v1419_v23  ;;  %v904_v54 = vpop.xlane.xlu0 %903 }
 0x85c   : > { %v920_v2 = vmul.f32 %v1435_v25, %v1417_v18 }
 0x85e   : > { %v926_v53 = vpack.c.bf16 %v921_v28, %v920_v2 }
 0x863   : > { %v907_v52 = vpop.xlane.xlu2 %906 }
 0x864   : > { %1436 = vrcp.f32 %v907_v52 }
 0x865   : > { %1438 = vrcp.f32 %v904_v54 }
 0x867   : > { %1271 = vmatmul.msk.bf16.gmra.mxu3 %vm480_vm9, %v926_v53 }
 0x86a   : > { %v1437_v62 = vpop.eup %1436 }
 0x86b   : > { %v1439_v1 = vpop.eup %1438  ;;  %v923_v3 = vmul.f32 %v1437_v62, %v1423_v32 }
 0x86c   : > { %v922_v4 = vmul.f32 %v1439_v1, %v1421_v29 }
 0x86e   : > { %v927_v5 = vpack.c.bf16 %v923_v3, %v922_v4  ;;  %v991_v11 = vpop.permute.xlu0 %990 }
 0x86f   : > { %1006 = vmatpush.bf16.msrb.mxu2 %v991_v11 }
 0x877   : > { %1272 = vmatmul.msk.bf16.gmra.mxu3 %vm480_vm9, %v927_v5 }
 0x8ca   : > { %v953_v9 = vpop.f32.mrf.mxu3 }
 0x8cb   : > { %v973_v20 = vmul.f32 %v953_v9, %v1718_v55 }
 0x8d2   : > { %v955_v10 = vpop.f32.mrf.mxu3 }
 0x8d3   : > { %v974_v21 = vmul.f32 %v955_v10, %v1733_v59  ;;  %v1363_v59 = vld [vmem:[%s1676_s22 + $0x5] ss:$0 sm:$0xff] }
 0x8da   : > { %v958_v13 = vpop.f32.mrf.mxu3 }
 0x8db   : > { %v975_v18 = vmul.f32 %v958_v13, %v1723_v56 }
 0x8dd   : > { %v981_v24 = vadd.f32 %v975_v18, %v973_v20  ;;  %v1289_v18 = vld [vmem:[%s1665_s23 + $0x2c] sm:$0xf] }
 0x8e2   : > { %v960_v14 = vpop.f32.mrf.mxu3 }
 0x8e3   : > { %v976_v19 = vmul.f32 %v960_v14, %v1738_v60 }
 0x8e5   : > { %v982_v26 = vadd.f32 %v976_v19, %v974_v21  ;;  %v1304_v19 = vld [vmem:[%s1665_s23 + $0x38] sm:$0xf0]  ;;  %v1285_v21 = vld [vmem:[%s1665_s23 + $0xc] sm:$0xf] }
 0x8e6   : > { %v1290_v20 = vor.u32 %v1304_v19, %v1289_v18 }
 0x8e8   : > { %1138 = vmatpush.bf16.xpose.msra.mxu2 %v1290_v20 }
 0x8ea   : > { %v963_v15 = vpop.f32.mrf.mxu3 }
 0x8eb   : > { %v977_v22 = vmul.f32 %v963_v15, %v1728_v57 }
 0x8ed   : > { %v983_v29 = vadd.f32 %v981_v24, %v977_v22  ;;  %v1303_v22 = vld [vmem:[%s1665_s23 + $0x18] sm:$0xf0]  ;;  %v1364_v24 = vld [vmem:[%s1676_s22 + $0x2] ss:$0 sm:$0xff]  ;;  %s1552_s23 = smov [#allocation5]  }
 0x8ee   : > { %s1155_s13 = sshll.u32 %s1552_s23, 4  ;;  %s1156_s13 = int_to_ptr.vmem [resolvable:$true] %s1155_s13 }
 0x8f2   : > { %v965_v16 = vpop.f32.mrf.mxu3 }
 0x8f3   : > { %v978_v23 = vmul.f32 %v965_v16, %v1743_v61 }
 0x8f5   : > { %v984_v30 = vadd.f32 %v982_v26, %v978_v23  ;;  %v1286_v23 = vor.u32 %v1303_v22, %v1285_v21 }
 0x8f7   : > { %1139 = vmatpush.bf16.xpose.msra.mxu2 %v1286_v23 }
 0x8fa   : > { %v968_v17 = vpop.f32.mrf.mxu3 }
 0x8fb   : > { %v979_v49 = vmul.f32 %v968_v17, %v1748_v63 }
 0x8fd   : > { %v985_v60 = vadd.f32 %v983_v29, %v979_v49 }
 0x902   : > { %v970_v27 = vpop.f32.mrf.mxu3 }
 0x903   : > { %v980_v56 = vmul.f32 %v970_v27, %v1753_v0 }
 0x905   : > { %v986_v31 = vadd.f32 %v984_v30, %v980_v56 }
 0x907   : > { %v987_v55 = vpack.c.bf16 %v986_v31, %v985_v60 }
 0x909   : > { %1273 = vmatmul.msk.bf16.vlgmr.msrb.gmra.mxu2 %vm324_vm1, %v987_v55 }
 0x98c   : > { %v1008_v57 = vpop.f32.mrf.mxu2 }
 0x98d   : > { %v1009_v32 = vadd.f32 %v1363_v59, %v1008_v57 }
 0x98f   : > { %v1951_v61 = vadd.f32 %v1009_v32, %v1836_v46 }
 0x991   : > { %v1015_v63 = vsel %vm324_vm1, %v1951_v61, 0.0 }
 0x992   : > { %1016 = vadd.xlane.f32.xlu2 %v1015_v63 }
 0x994   : > { %v1010_v33 = vpop.f32.mrf.mxu2 }
 0x995   : > { %v1011_v58 = vadd.f32 %v1363_v59, %v1010_v33 }
 0x997   : > { %v1956_v0 = vadd.f32 %v1011_v58, %v1841_v50 }
 0x999   : > { %v1018_v34 = vsel %vm324_vm1, %v1956_v0, 0.0 }
 0x99a   : > { %1019 = vadd.xlane.f32.xlu1 %v1018_v34 }
 0xa05   : > { %v1017_v46 = vpop.xlane.xlu2 %1016 }
 0xa06   : > { %v1021_v38 = vmul.f32 %v1017_v46, %v1693_v12 }
 0xa08   : > { %v1023_v6 = vsub.f32 %v1951_v61, %v1021_v38 }
 0xa0a   : > { %v1025_v39 = vmul.f32 %v1023_v6, %v1023_v6 }
 0xa0c   : > { %v1027_v40 = vsel %vm324_vm1, %v1025_v39, 0.0 }
 0xa0d   : > { %v1020_v50 = vpop.xlane.xlu1 %1019  ;;  %1028 = vadd.xlane.f32.xlu2 %v1027_v40  ;;  %v1365_v40 = vld [vmem:[%s1676_s22 + $0x6] ss:$0 sm:$0xff]  ;;  %s1553_s22 = smov 128  }
 0xa0e   : > { %v1022_v41 = vmul.f32 %v1020_v50, %v1693_v12 }
 0xa10   : > { %v1024_v42 = vsub.f32 %v1956_v0, %v1022_v41 }
 0xa12   : > { %v1026_v43 = vmul.f32 %v1024_v42, %v1024_v42 }
 0xa14   : > { %v1030_v7 = vsel %vm324_vm1, %v1026_v43, 0.0 }
 0xa15   : > { %1031 = vadd.xlane.f32.xlu0 %v1030_v7 }
 0xa80   : > { %v1029_v48 = vpop.xlane.xlu2 %1028 }
 0xa81   : > { %v1033_v51 = vmul.f32 %v1029_v48, %v1693_v12 }
 0xa83   : > { %v1035_v25 = vadd.f32 1e-05, %v1033_v51 }
 0xa85   : > { %1440 = vrsqrt.f32 %v1035_v25  ;;  %vm1043_vm2 = vweird.f32 %v1035_v25 }
 0xa88   : > { %v1032_v28 = vpop.xlane.xlu0 %1031 }
 0xa89   : > { %v1034_v2 = vmul.f32 %v1032_v28, %v1693_v12 }
 0xa8b   : > { %v1441_v52 = vpop.eup %1440  ;;  %v1036_v53 = vadd.f32 1e-05, %v1034_v2 }
 0xa8c   : > { %v1038_v54 = vmul.f32 %v1441_v52, %v1035_v25  ;;  %vm1044_vm0 = vweird.f32 %v1441_v52 }
 0xa8d   : > { %1442 = vrsqrt.f32 %v1036_v53  ;;  %vm1045_vm4 = vmor %vm1043_vm2, %vm1044_vm0  ;;  %vm1053_vm5 = vweird.f32 %v1036_v53 }
 0xa8e   : > { %v1039_v62 = vmul.f32 %v1441_v52, %v1038_v54 }
 0xa90   : > { %v1040_v1 = vmul.f32 0.5, %v1039_v62 }
 0xa92   : > { %v1041_v4 = vsub.f32 1.5, %v1040_v1 }
 0xa93   : > { %v1443_v3 = vpop.eup %1442 }
 0xa94   : > { %v1048_v5 = vmul.f32 %v1443_v3, %v1036_v53  ;;  %v1042_v9 = vmul.f32 %v1441_v52, %v1041_v4  ;;  %vm1054_vm3 = vweird.f32 %v1443_v3 }
 0xa95   : > { %vm1055_vm6 = vmor %vm1053_vm5, %vm1054_vm3 }
 0xa96   : > { %v1049_v8 = vmul.f32 %v1443_v3, %v1048_v5  ;;  %v1046_v12 = vsel %vm1045_vm4, %v1441_v52, %v1042_v9 }
 0xa97   : > { %v1057_v15 = vmul.f32 %v1046_v12, %v1023_v6 }
 0xa98   : > { %v1050_v10 = vmul.f32 0.5, %v1049_v8 }
 0xa9a   : > { %v1051_v11 = vsub.f32 1.5, %v1050_v10 }
 0xa9c   : > { %v1052_v13 = vmul.f32 %v1443_v3, %v1051_v11 }
 0xa9e   : > { %v1056_v14 = vsel %vm1055_vm6, %v1443_v3, %v1052_v13 }
 0xa9f   : > { %v1058_v16 = vmul.f32 %v1056_v14, %v1024_v42 }
 0xaa1   : > { %v1059_v17 = vpack.c.bf16 %v1058_v16, %v1057_v15 }
 0xaa3   : > { %1282 = vmatmul.msk.bf16.vlgmr.msrb.gmra.mxu1 %vm324_vm1, %v1059_v17 }
 0xb20   : > { %v1090_v26 = vpop.f32.mrf.mxu1 }
 0xb21   : > { %v1091_v49 = vadd.f32 %v1364_v24, %v1090_v26 }
 0xb23   : > { %v1095_v27 = vmul.f32 %v1091_v49, %v1091_v49 }
 0xb25   : > { %v1097_v29 = vmul.f32 %v1095_v27, %v1091_v49 }
 0xb27   : > { %v1099_v30 = vmul.f32 0.044715, %v1097_v29 }
 0xb28   : > { %v1092_v56 = vpop.f32.mrf.mxu1 }
 0xb29   : > { %v1101_v60 = vadd.f32 %v1099_v30, %v1091_v49  ;;  %v1093_v31 = vadd.f32 %v1364_v24, %v1092_v56 }
 0xb2b   : > { %v1103_v55 = vmul.f32 0.7978846, %v1101_v60  ;;  %v1096_v59 = vmul.f32 %v1093_v31, %v1093_v31 }
 0xb2d   : > { %v1098_v57 = vmul.f32 %v1096_v59, %v1093_v31  ;;  %1444 = vtanh.f32 %v1103_v55 }
 0xb2f   : > { %v1100_v32 = vmul.f32 0.044715, %v1098_v57 }
 0xb31   : > { %v1102_v63 = vadd.f32 %v1100_v32, %v1093_v31 }
 0xb33   : > { %v1104_v33 = vmul.f32 0.7978846, %v1102_v63  ;;  %v1445_v58 = vpop.eup %1444 }
 0xb34   : > { %v1107_v34 = vadd.f32 1.0, %v1445_v58 }
 0xb35   : > { %1446 = vtanh.f32 %v1104_v33 }
 0xb36   : > { %v1109_v36 = vmul.f32 0.5, %v1107_v34 }
 0xb38   : > { %v1111_v38 = vmul.f32 %v1109_v36, %v1091_v49 }
 0xb3b   : > { %v1447_v35 = vpop.eup %1446 }
 0xb3c   : > { %v1108_v37 = vadd.f32 1.0, %v1447_v35 }
 0xb3e   : > { %v1110_v46 = vmul.f32 0.5, %v1108_v37 }
 0xb40   : > { %v1112_v6 = vmul.f32 %v1110_v46, %v1093_v31 }
 0xb42   : > { %v1113_v39 = vpack.c.bf16 %v1112_v6, %v1111_v38 }
 0xb44   : > { %1140 = vmatmul.bf16.vlgmr.msra.gmra.mxu2 %v1113_v39 }
 0xbc7   : > { %v1141_v50 = vpop.f32.mrf.mxu2 }
 0xbc8   : > { %v1142_v41 = vadd.f32 %v1365_v40, %v1141_v50 }
 0xbca   : > { %v1146_v42 = vadd.f32 %v1142_v41, %v1951_v61 }
 0xbcc   : > { %1148 = vst.msk [vmem:[#allocation5] sm:$0xff] %vm324_vm1, %v1146_v42 }
 0xbcf   : > { %v1143_v43 = vpop.f32.mrf.mxu2 }
 0xbd0   : > { %v1144_v7 = vadd.f32 %v1365_v40, %v1143_v43 }
 0xbd2   : > { %v1147_v44 = vadd.f32 %v1144_v7, %v1956_v0 }
 0xbd4   : > { %1149 = vst.msk [vmem:[#allocation5 + $0x8] sm:$0xff] %vm324_vm1, %v1147_v44 }
 0xbd5   : > { %1308 = dma.vmem_to_hbm [thread:$0]  (%p1316_p7), %s1156_s13, 256, %s1158_s20, [#allocation4], %s1553_s22, %s1553_s22, %s1554_s27  }
 0xbd6   : > { %1527 = dma.done.wait (%p1316_p7), [#allocation4], 256  }
 0xbd7   : > { %1529 = vsyncadd (%p1316_p7), [#allocation4], 4294967040 }
 0xbd8 PF: > { %p18_p9 = scmp.ge.s32.totalorder %s1617_s29, 14   ;;  %s2011_s24 = smov %s1536_s25 }
 0xbd9   : > { %s2012_s25 = smov %s1540_s26  ;;  %s2013_s26 = smov %s1627_s9 }
 0xbda   : > { %s2014_s27 = smov %s1617_s29  ;;  %20 = sbr.rel (!%p18_p9) target bundleno = 4 (0x4), region = 92 }
 0xbdf   :  { %1174 = vsyncpa [#allocation3], 1 }
 0xbe0   :  { %1176 = vsyncpa [#allocation3 + $0x1], 1 }
 0xbe1   :  { %1177 = vsyncpa [#allocation4], 1 }
 0xbe2   :  { %1179 = vsyncpa [#allocation4 + $0x1], 1 }

</bundles_post_ra>
